<compile_context>
chip_gen: v7x
topology: tpu7x:2x2x1
jax: 0.10.0
libtpu: 0.0.40
codegen_flags: <defaults>
</compile_context>

<pallas_src>
import functools

import jax
import jax.numpy as jnp
from jax.experimental import pallas as pl
from jax.experimental.pallas import tpu as pltpu

NUM_CLASSES = 5
CLS_PAD = 128   # lane-dense classifier width; sliced back to NUM_CLASSES outside
LANE = 128


def _round_up(x, m):
    return (x + m - 1) // m * m


def _fused_conv_pool_cls_kernel(x_ref, w_ref, b_ref, cw_ref, cb_ref,
                                feat_ref, logit_ref, acc_ref, *, tile_h):
    # x_ref    : (1, H+2, W+2, C)   bf16 padded image (VMEM-resident across t)
    # w_ref    : (K_PAD, F)         bf16 conv weight, K zero-padded to 128
    # b_ref    : (1, F)             f32  conv bias
    # cw_ref   : (F, CLS_PAD)       bf16 zero-padded classifier weight
    # cb_ref   : (1, CLS_PAD)       f32  zero-padded classifier bias
    # feat_ref : (1, tile_h*W, F)   bf16 feature band (spatial flattened)
    # logit_ref: (1, 1, CLS_PAD)    f32  logits, written on the last band only
    # acc_ref  : (1, F)             f32  running spatial sum (global avg pool)
    t = pl.program_id(1)
    n_t = pl.num_programs(1)
    th = tile_h
    wd = x_ref.shape[2] - 2
    cin = x_ref.shape[3]
    kpad = w_ref.shape[0]

    # Slice this step's haloed (th+2)-row band out of the resident padded
    # image — no halo duplication in HBM.
    start = pl.multiple_of(t * th, th)
    band = x_ref[0, pl.ds(start, th + 2)]                 # (th+2, W+2, C) bf16

    # im2col patches, built lane-dense to K_PAD (zero tail matches the zero
    # rows padded onto w_ref).
    # TODO(synk): for a real backbone stem (large H*W, tiny C) build these via
    #             static-slice stores into a VMEM scratch / channel-folded lane
    #             layout instead of a 9-way concatenate of tiny-last-dim slices.
    cols = [band[dh:dh + th, dw:dw + wd, :]
            for dh in range(3) for dw in range(3)]        # 9 x (th, W, C)
    if kpad > 9 * cin:
        cols.append(jnp.zeros((th, wd, kpad - 9 * cin), jnp.bfloat16))
    patches = jnp.concatenate(cols, axis=-1).reshape(th * wd, kpad)   # bf16

    conv_out = jnp.dot(patches, w_ref[...],
                       preferred_element_type=jnp.float32)    # (th*W, F) f32
    act = jnp.maximum(conv_out + b_ref[...], 0.0)             # f32 epilogue
    feat_ref[0] = act.astype(feat_ref.dtype)                  # bf16 writeback

    # Fused global average pool: accumulate per-band spatial sums in f32.
    @pl.when(t == 0)
    def _():
        acc_ref[...] = jnp.zeros_like(acc_ref)

    acc_ref[...] += jnp.sum(act, axis=0, keepdims=True)       # (1, F)

    # Last band of this image: finish the mean and apply the padded classifier.
    @pl.when(t == n_t - 1)
    def _():
        pooled = acc_ref[...] * (1.0 / (th * wd * n_t))       # (1, F) f32
        logits = jnp.dot(pooled.astype(jnp.bfloat16), cw_ref[...],
                         preferred_element_type=jnp.float32) + cb_ref[...]
        logit_ref[0] = logits                                 # (1, CLS_PAD)


def _vmem_capacity_bytes():
    """64 MiB per TC on v7x, 128 MiB on v5e/v6e; safe fallback if query fails."""
    try:
        cap = getattr(pltpu.get_tpu_info(), "vmem_capacity_bytes", None)
        if cap:
            return int(cap)
    except Exception:
        pass
    return 128 * 1024 * 1024


def _step_vmem_bytes(tile_h, H, W, C, F, k_pad):
    """Rough per-step VMEM footprint: double-buffered resident image + feat
    out tile, resident (double-buffered) weights, and in-register temporaries.
    Used for generation-aware tile_h selection."""
    img = 2 * (H + 2) * _round_up(W + 2, 16) * _round_up(C, LANE) * 2  # bf16
    feat = 2 * tile_h * W * _round_up(F, LANE) * 2                     # bf16
    wts = 2 * (k_pad * F * 2 + F * 4 + F * CLS_PAD * 2 + CLS_PAD * 4)
    tmp = tile_h * W * (k_pad * 2 + 2 * F * 4)        # patches + f32 conv/act
    return img + feat + wts + tmp


def _pick_tile_h(H, W, C, F, k_pad, budget):
    for th in (256, 128, 64, 32, 16, 8):
        if H % th == 0 and _step_vmem_bytes(th, H, W, C, F, k_pad) <= budget:
            return th
    for th in range(min(H, 8), 0, -1):
        if H % th == 0:
            return th
    return H


def init_params(key, c_in, n_features, num_classes=NUM_CLASSES):
    # conv_w rows are flattened (kh, kw, c)-major: a real PyTorch (F, C, 3, 3)
    # stem weight must be converted via w.permute(2, 3, 1, 0).reshape(9*C, F)
    # or results will silently differ.
    k1, k2, k3, k4 = jax.random.split(key, 4)
    return dict(
        conv_w=jax.random.normal(k1, (9 * c_in, n_features), jnp.float32) * 0.1,
        conv_b=jax.random.normal(k2, (1, n_features), jnp.float32) * 0.01,
        cls_w=jax.random.normal(k3, (n_features, num_classes), jnp.float32) * 0.1,
        cls_b=jax.random.normal(k4, (1, num_classes), jnp.float32) * 0.01,
    )


def cassava_forward_nhwc(x_nhwc, params, *, tile_h=None):
    """NHWC fast path: zero boundary transposes.  Returns (logits, feats_nhwc).
    feats are stored in bf16 (deliberate deviation from the fp32 PyTorch
    backbone; pooling / classifier accumulation stays f32 inside the kernel)."""
    B, H, W, C = x_nhwc.shape
    F = params["conv_w"].shape[1]
    assert F % LANE == 0, "n_features must be a multiple of 128 (lane-dense)"

    k_pad = _round_up(9 * C, LANE)
    vmem_cap = _vmem_capacity_bytes()
    vmem_limit = min((vmem_cap * 3) // 4, 64 * 1024 * 1024)
    if tile_h is None:
        tile_h = _pick_tile_h(H, W, C, F, k_pad, int(0.8 * vmem_limit))
    assert H % tile_h == 0
    HT = H // tile_h

    # Padded image in bf16.  Its block index below is constant over the tile
    # axis, so each image is DMA'd from HBM exactly once and stays resident
    # while its HT bands are produced.
    x_pad = jnp.pad(x_nhwc.astype(jnp.bfloat16),
                    ((0, 0), (1, 1), (1, 1), (0, 0)))

    conv_w = jnp.zeros((k_pad, F), jnp.bfloat16)
    conv_w = conv_w.at[:9 * C].set(params["conv_w"].astype(jnp.bfloat16))
    conv_b = params["conv_b"].astype(jnp.float32).reshape(1, F)
    cls_w = jnp.zeros((F, CLS_PAD), jnp.bfloat16)
    cls_w = cls_w.at[:, :NUM_CLASSES].set(params["cls_w"].astype(jnp.bfloat16))
    cls_b = jnp.zeros((1, CLS_PAD), jnp.float32)
    cls_b = cls_b.at[:, :NUM_CLASSES].set(params["cls_b"].astype(jnp.float32))

    kernel = functools.partial(_fused_conv_pool_cls_kernel, tile_h=tile_h)

    cost = pl.CostEstimate(
        flops=2 * B * H * W * k_pad * F + 2 * B * F * CLS_PAD,
        transcendentals=0,
        bytes_accessed=(B * (H + 2) * (W + 2) * C * 2      # input read (bf16)
                        + B * H * W * F * 2                 # feat write (bf16)
                        + k_pad * F * 2 + F * CLS_PAD * 2   # weights
                        + F * 4 + CLS_PAD * 4 + B * CLS_PAD * 4),
    )

    feats_flat, logits_pad = pl.pallas_call(
        kernel,
        out_shape=(
            jax.ShapeDtypeStruct((B, H * W, F), jnp.bfloat16),
            jax.ShapeDtypeStruct((B, 1, CLS_PAD), jnp.float32),
        ),
        grid_spec=pltpu.PrefetchScalarGridSpec(
            num_scalar_prefetch=0,
            grid=(B, HT),
            in_specs=[
                pl.BlockSpec((1, H + 2, W + 2, C), lambda b, t: (b, 0, 0, 0)),
                pl.BlockSpec((k_pad, F), lambda b, t: (0, 0)),
                pl.BlockSpec((1, F), lambda b, t: (0, 0)),
                pl.BlockSpec((F, CLS_PAD), lambda b, t: (0, 0)),
                pl.BlockSpec((1, CLS_PAD), lambda b, t: (0, 0)),
            ],
            out_specs=[
                pl.BlockSpec((1, tile_h * W, F), lambda b, t: (b, t, 0)),
                pl.BlockSpec((1, 1, CLS_PAD), lambda b, t: (b, 0, 0)),
            ],
            scratch_shapes=[pltpu.VMEM((1, F), jnp.float32)],
        ),
        compiler_params=pltpu.CompilerParams(
            dimension_semantics=("parallel", "arbitrary"),
            vmem_limit_bytes=vmem_limit,
        ),
        cost_estimate=cost,
    )(x_pad, conv_w, conv_b, cls_w, cls_b)

    logits = logits_pad[:, 0, :NUM_CLASSES]
    feats_nhwc = feats_flat.reshape(B, H, W, F)   # free metadata reshape
    return logits, feats_nhwc


def cassava_forward(x_nchw, params, *, tile_h=None):
    """PyTorch-layout (NCHW) compatibility wrapper.
    TODO(synk): prefer cassava_forward_nhwc — each transpose here is a full
    extra HBM read+write of the input / feature map outside the kernel."""
    x_nhwc = jnp.transpose(x_nchw, (0, 2, 3, 1))
    logits, feats_nhwc = cassava_forward_nhwc(x_nhwc, params, tile_h=tile_h)
    return logits, jnp.transpose(feats_nhwc, (0, 3, 1, 2))


if __name__ == "__main__":
    key = jax.random.PRNGKey(0)
    kx, kp = jax.random.split(key)

    B, C_in, H, W = 2, 4, 16, 16     # even B so both v7x TensorCores are used
    n_features = 128                 # 128-lane aligned feature width

    x_nchw = jax.random.normal(kx, (B, C_in, H, W), jnp.float32)
    x_nhwc = jnp.transpose(x_nchw, (0, 2, 3, 1))
    params = init_params(kp, C_in, n_features)

    # NHWC fast path (tile_h=8 -> 2 bands per image, exercises accumulation).
    fwd = jax.jit(functools.partial(cassava_forward_nhwc, tile_h=8))
    logits, feats = fwd(x_nhwc, params)
    jax.block_until_ready((logits, feats))

    # Pure-JAX reference with the same bf16 rounding of the matmul inputs.
    xb = x_nhwc.astype(jnp.bfloat16).astype(jnp.float32)
    wb = params["conv_w"].astype(jnp.bfloat16).astype(jnp.float32)
    xp = jnp.pad(xb, ((0, 0), (1, 1), (1, 1), (0, 0)))
    cols = [xp[:, dh:dh + H, dw:dw + W, :] for dh in range(3) for dw in range(3)]
    patches = jnp.concatenate(cols, axis=-1).reshape(B * H * W, 9 * C_in)
    feat_flat = jnp.maximum(patches @ wb + params["conv_b"], 0.0)
    feat_ref_nhwc = feat_flat.reshape(B, H, W, n_features)
    pooled_ref = feat_ref_nhwc.reshape(B, H * W, n_features).mean(axis=1)
    logits_ref = pooled_ref @ params["cls_w"] + params["cls_b"]

    assert logits.shape == (B, NUM_CLASSES)
    assert feats.shape == (B, H, W, n_features)
    assert feats.dtype == jnp.bfloat16
    assert jnp.allclose(logits, logits_ref, atol=2e-2, rtol=2e-2)
    assert jnp.allclose(feats.astype(jnp.float32), feat_ref_nhwc,
                        atol=2e-2, rtol=2e-2)

    # NCHW compatibility path (matches PyTorch module layout).
    logits2, feats_nchw = jax.jit(
        functools.partial(cassava_forward, tile_h=8))(x_nchw, params)
    jax.block_until_ready((logits2, feats_nchw))
    assert feats_nchw.shape == (B, n_features, H, W)
    assert jnp.allclose(logits2, logits_ref, atol=2e-2, rtol=2e-2)
    assert jnp.allclose(feats_nchw.astype(jnp.float32),
                        jnp.transpose(feat_ref_nhwc, (0, 3, 1, 2)),
                        atol=2e-2, rtol=2e-2)

    print("KERNEL_OK")
</pallas_src>

<mosaic_0001>
module attributes {stable_mosaic.version = 11 : i64} {
  func.func @_fused_conv_pool_cls_kernel(%arg0: i32, %arg1: i32, %arg2: memref<1x18x18x4xbf16, #tpu.memory_space<vmem>>, %arg3: memref<128x128xbf16, #tpu.memory_space<vmem>>, %arg4: memref<1x128xf32, #tpu.memory_space<vmem>>, %arg5: memref<128x128xbf16, #tpu.memory_space<vmem>>, %arg6: memref<1x128xf32, #tpu.memory_space<vmem>>, %arg7: memref<1x128x128xbf16, #tpu.memory_space<vmem>>, %arg8: memref<1x1x128xf32, #tpu.memory_space<vmem>>, %arg9: memref<1x128xf32, #tpu.memory_space<vmem>>) attributes {dimension_semantics = [#tpu.dimension_semantics<parallel>, #tpu.dimension_semantics<arbitrary>], iteration_bounds = array<i64: 2, 2>, scalar_prefetch = 0 : i64, scratch_operands = 1 : i64, tpu.core_type = #tpu.core_type<tc>, window_params = [{transform_indices = @transform_0, window_bounds = array<i64: 1, 18, 18, 4>}, {pipeline_mode = #tpu.pipeline_mode<synchronous>, transform_indices = @transform_1, window_bounds = array<i64: 128, 128>}, {pipeline_mode = #tpu.pipeline_mode<synchronous>, transform_indices = @transform_2, window_bounds = array<i64: 1, 128>}, {pipeline_mode = #tpu.pipeline_mode<synchronous>, transform_indices = @transform_3, window_bounds = array<i64: 128, 128>}, {pipeline_mode = #tpu.pipeline_mode<synchronous>, transform_indices = @transform_4, window_bounds = array<i64: 1, 128>}, {transform_indices = @transform_5, window_bounds = array<i64: 1, 128, 128>}, {transform_indices = @transform_6, window_bounds = array<i64: 1, 1, 128>}]} {
    %c8_i32 = arith.constant 8 : i32
    %0 = arith.muli %arg1, %c8_i32 : i32
    %1 = tpu.assume_multiple %0, 8 : i32
    %c0 = arith.constant 0 : index
    %2 = arith.index_cast %1 : i32 to index
    %c0_0 = arith.constant 0 : index
    %c0_1 = arith.constant 0 : index
    %3 = vector.load %arg2[%c0, %2, %c0_0, %c0_1] : memref<1x18x18x4xbf16, #tpu.memory_space<vmem>>, vector<1x10x18x4xbf16>
    %4 = vector.shape_cast %3 : vector<1x10x18x4xbf16> to vector<10x18x4xbf16>
    %5 = vector.extract_strided_slice %4 {offsets = [0, 0, 0], sizes = [8, 16, 4], strides = [1, 1, 1]} : vector<10x18x4xbf16> to vector<8x16x4xbf16>
    %6 = vector.extract_strided_slice %4 {offsets = [0, 1, 0], sizes = [8, 16, 4], strides = [1, 1, 1]} : vector<10x18x4xbf16> to vector<8x16x4xbf16>
    %7 = vector.extract_strided_slice %4 {offsets = [0, 2, 0], sizes = [8, 16, 4], strides = [1, 1, 1]} : vector<10x18x4xbf16> to vector<8x16x4xbf16>
    %8 = vector.extract_strided_slice %4 {offsets = [1, 0, 0], sizes = [8, 16, 4], strides = [1, 1, 1]} : vector<10x18x4xbf16> to vector<8x16x4xbf16>
    %9 = vector.extract_strided_slice %4 {offsets = [1, 1, 0], sizes = [8, 16, 4], strides = [1, 1, 1]} : vector<10x18x4xbf16> to vector<8x16x4xbf16>
    %10 = vector.extract_strided_slice %4 {offsets = [1, 2, 0], sizes = [8, 16, 4], strides = [1, 1, 1]} : vector<10x18x4xbf16> to vector<8x16x4xbf16>
    %11 = vector.extract_strided_slice %4 {offsets = [2, 0, 0], sizes = [8, 16, 4], strides = [1, 1, 1]} : vector<10x18x4xbf16> to vector<8x16x4xbf16>
    %12 = vector.extract_strided_slice %4 {offsets = [2, 1, 0], sizes = [8, 16, 4], strides = [1, 1, 1]} : vector<10x18x4xbf16> to vector<8x16x4xbf16>
    %13 = vector.extract_strided_slice %4 {offsets = [2, 2, 0], sizes = [8, 16, 4], strides = [1, 1, 1]} : vector<10x18x4xbf16> to vector<8x16x4xbf16>
    %cst = arith.constant 0.000000e+00 : bf16
    %14 = vector.broadcast %cst : bf16 to vector<8x16x92xbf16>
    %15 = tpu.concatenate %5, %6, %7, %8, %9, %10, %11, %12, %13, %14 in 2 : vector<8x16x4xbf16>, vector<8x16x4xbf16>, vector<8x16x4xbf16>, vector<8x16x4xbf16>, vector<8x16x4xbf16>, vector<8x16x4xbf16>, vector<8x16x4xbf16>, vector<8x16x4xbf16>, vector<8x16x4xbf16>, vector<8x16x92xbf16> -> vector<8x16x128xbf16>
    %16 = vector.shape_cast %15 : vector<8x16x128xbf16> to vector<128x128xbf16>
    %c0_2 = arith.constant 0 : index
    %c0_3 = arith.constant 0 : index
    %17 = vector.load %arg3[%c0_2, %c0_3] : memref<128x128xbf16, #tpu.memory_space<vmem>>, vector<128x128xbf16>
    %cst_4 = arith.constant dense<0.000000e+00> : vector<128x128xf32>
    %18 = tpu.matmul %16, %17, %cst_4 {dimension_numbers = #tpu.dot_dimension_numbers<[1], [0], [0], [1], [0, 0, 1, 1], [], []>} : vector<128x128xbf16>, vector<128x128xbf16>, vector<128x128xf32> -> vector<128x128xf32>
    %c0_5 = arith.constant 0 : index
    %c0_6 = arith.constant 0 : index
    %19 = vector.load %arg4[%c0_5, %c0_6] : memref<1x128xf32, #tpu.memory_space<vmem>>, vector<1x128xf32>
    %20 = vector.broadcast %19 : vector<1x128xf32> to vector<128x128xf32>
    %21 = arith.addf %18, %20 : vector<128x128xf32>
    %cst_7 = arith.constant 0.000000e+00 : f32
    %22 = vector.broadcast %cst_7 : f32 to vector<128x128xf32>
    %23 = arith.maximumf %21, %22 : vector<128x128xf32>
    %24 = arith.truncf %23 : vector<128x128xf32> to vector<128x128xbf16>
    %c0_8 = arith.constant 0 : index
    %c0_9 = arith.constant 0 : index
    %c0_10 = arith.constant 0 : index
    %25 = vector.load %arg7[%c0_8, %c0_9, %c0_10] : memref<1x128x128xbf16, #tpu.memory_space<vmem>>, vector<1x128x128xbf16>
    %26 = vector.shape_cast %25 : vector<1x128x128xbf16> to vector<128x128xbf16>
    %27 = vector.shape_cast %24 : vector<128x128xbf16> to vector<1x128x128xbf16>
    tpu.vector_store %arg7[%c0_8, %c0_9, %c0_10], %27 {strides = array<i32>} : memref<1x128x128xbf16, #tpu.memory_space<vmem>>, vector<1x128x128xbf16>,
    %c0_i32 = arith.constant 0 : i32
    %28 = arith.cmpi eq, %arg1, %c0_i32 : i32
    %29 = arith.extui %28 : i1 to i32
    %c0_i32_11 = arith.constant 0 : i32
    %30 = arith.cmpi ne, %29, %c0_i32_11 : i32
    scf.if %30 {
      %cst_18 = arith.constant 0.000000e+00 : f32
      %39 = vector.broadcast %cst_18 : f32 to vector<1x128xf32>
      %c0_19 = arith.constant 0 : index
      %c0_20 = arith.constant 0 : index
      %40 = vector.load %arg9[%c0_19, %c0_20] : memref<1x128xf32, #tpu.memory_space<vmem>>, vector<1x128xf32>
      tpu.vector_store %arg9[%c0_19, %c0_20], %39 {strides = array<i32>} : memref<1x128xf32, #tpu.memory_space<vmem>>, vector<1x128xf32>,
    } else {
    }
    %c0_12 = arith.constant 0 : index
    %c0_13 = arith.constant 0 : index
    %31 = vector.load %arg9[%c0_12, %c0_13] : memref<1x128xf32, #tpu.memory_space<vmem>>, vector<1x128xf32>
    %cst_14 = arith.constant dense<0.000000e+00> : vector<128xf32>
    %32 = vector.multi_reduction <add>, %23, %cst_14 [0] : vector<128x128xf32> to vector<128xf32>
    %33 = vector.shape_cast %32 : vector<128xf32> to vector<1x128xf32>
    %34 = arith.addf %31, %33 : vector<1x128xf32>
    %c0_15 = arith.constant 0 : index
    %c0_16 = arith.constant 0 : index
    %35 = vector.load %arg9[%c0_15, %c0_16] : memref<1x128xf32, #tpu.memory_space<vmem>>, vector<1x128xf32>
    tpu.vector_store %arg9[%c0_15, %c0_16], %34 {strides = array<i32>} : memref<1x128xf32, #tpu.memory_space<vmem>>, vector<1x128xf32>,
    %c1_i32 = arith.constant 1 : i32
    %36 = arith.cmpi eq, %arg1, %c1_i32 : i32
    %37 = arith.extui %36 : i1 to i32
    %c0_i32_17 = arith.constant 0 : i32
    %38 = arith.cmpi ne, %37, %c0_i32_17 : i32
    scf.if %38 {
      %c0_18 = arith.constant 0 : index
      %c0_19 = arith.constant 0 : index
      %39 = vector.load %arg9[%c0_18, %c0_19] : memref<1x128xf32, #tpu.memory_space<vmem>>, vector<1x128xf32>
      %cst_20 = arith.constant 3.906250e-03 : f32
      %40 = vector.broadcast %cst_20 : f32 to vector<1x128xf32>
      %41 = arith.mulf %39, %40 : vector<1x128xf32>
      %42 = arith.truncf %41 : vector<1x128xf32> to vector<1x128xbf16>
      %c0_21 = arith.constant 0 : index
      %c0_22 = arith.constant 0 : index
      %43 = vector.load %arg5[%c0_21, %c0_22] : memref<128x128xbf16, #tpu.memory_space<vmem>>, vector<128x128xbf16>
      %cst_23 = arith.constant dense<0.000000e+00> : vector<1x128xf32>
      %44 = tpu.matmul %42, %43, %cst_23 {dimension_numbers = #tpu.dot_dimension_numbers<[1], [0], [0], [1], [0, 0, 1, 1], [], []>} : vector<1x128xbf16>, vector<128x128xbf16>, vector<1x128xf32> -> vector<1x128xf32>
      %c0_24 = arith.constant 0 : index
      %c0_25 = arith.constant 0 : index
      %45 = vector.load %arg6[%c0_24, %c0_25] : memref<1x128xf32, #tpu.memory_space<vmem>>, vector<1x128xf32>
      %46 = arith.addf %44, %45 : vector<1x128xf32>
      %c0_26 = arith.constant 0 : index
      %c0_27 = arith.constant 0 : index
      %c0_28 = arith.constant 0 : index
      %47 = vector.load %arg8[%c0_26, %c0_27, %c0_28] : memref<1x1x128xf32, #tpu.memory_space<vmem>>, vector<1x1x128xf32>
      %48 = vector.shape_cast %47 : vector<1x1x128xf32> to vector<1x128xf32>
      %49 = vector.shape_cast %46 : vector<1x128xf32> to vector<1x1x128xf32>
      tpu.vector_store %arg8[%c0_26, %c0_27, %c0_28], %49 {strides = array<i32>} : memref<1x1x128xf32, #tpu.memory_space<vmem>>, vector<1x1x128xf32>,
    } else {
    }
    return
  }
  func.func @transform_0(%arg0: i32, %arg1: i32) -> (i32, i32, i32, i32) {
    %c0_i32 = arith.constant 0 : i32
    %c0_i32_0 = arith.constant 0 : i32
    %c0_i32_1 = arith.constant 0 : i32
    %c0_i32_2 = arith.constant 0 : i32
    return %arg0, %c0_i32, %c0_i32_0, %c0_i32_1 : i32, i32, i32, i32
  }
  func.func @transform_1(%arg0: i32, %arg1: i32) -> (i32, i32) {
    %c0_i32 = arith.constant 0 : i32
    %c0_i32_0 = arith.constant 0 : i32
    %c0_i32_1 = arith.constant 0 : i32
    return %c0_i32, %c0_i32_0 : i32, i32
  }
  func.func @transform_2(%arg0: i32, %arg1: i32) -> (i32, i32) {
    %c0_i32 = arith.constant 0 : i32
    %c0_i32_0 = arith.constant 0 : i32
    %c0_i32_1 = arith.constant 0 : i32
    return %c0_i32, %c0_i32_0 : i32, i32
  }
  func.func @transform_3(%arg0: i32, %arg1: i32) -> (i32, i32) {
    %c0_i32 = arith.constant 0 : i32
    %c0_i32_0 = arith.constant 0 : i32
    %c0_i32_1 = arith.constant 0 : i32
    return %c0_i32, %c0_i32_0 : i32, i32
  }
  func.func @transform_4(%arg0: i32, %arg1: i32) -> (i32, i32) {
    %c0_i32 = arith.constant 0 : i32
    %c0_i32_0 = arith.constant 0 : i32
    %c0_i32_1 = arith.constant 0 : i32
    return %c0_i32, %c0_i32_0 : i32, i32
  }
  func.func @transform_5(%arg0: i32, %arg1: i32) -> (i32, i32, i32) {
    %c0_i32 = arith.constant 0 : i32
    %c0_i32_0 = arith.constant 0 : i32
    return %arg0, %arg1, %c0_i32 : i32, i32, i32
  }
  func.func @transform_6(%arg0: i32, %arg1: i32) -> (i32, i32, i32) {
    %c0_i32 = arith.constant 0 : i32
    %c0_i32_0 = arith.constant 0 : i32
    %c0_i32_1 = arith.constant 0 : i32
    return %arg0, %c0_i32, %c0_i32_0 : i32, i32, i32
  }
}

</mosaic_0001>

<bundles_post_ra>
// kernel: cassava_forward_nhwc.1
= control target key start
LH: loop header
LB: loop body
LE: loop exit
PB: predicated region body
PF: predicated region fallthrough
CT: control target
= control target key end

     0   :  { %s3052_s0 = inlined_call_operand.hbm [shape: bf16[2,18,18,4], index: 0, kind: input, shape index: {}]   ;;  %s3053_s1 = inlined_call_operand.hbm [shape: bf16[128,128], index: 1, kind: input, shape index: {}]   ;;  %s3054_s2 = inlined_call_operand.hbm [shape: f32[1,128], index: 2, kind: input, shape index: {}]   ;;  %s3055_s3 = inlined_call_operand.hbm [shape: bf16[128,128], index: 3, kind: input, shape index: {}]   ;;  %s3056_s4 = inlined_call_operand.hbm [shape: f32[1,128], index: 4, kind: input, shape index: {}]   ;;  %s3057_s5 = inlined_call_operand.hbm [shape: bf16[2,256,128], index: 5, kind: output, shape index: {0}]   ;;  %s3058_s6 = inlined_call_operand.hbm [shape: f32[2,1,128], index: 6, kind: output, shape index: {1}]  }
   0x1   :  { %3084 = sst [smem:[#allocation29_spill]] %s3052_s0 }
   0x2   :  { %3085 = sst [smem:[#allocation30_spill]] %s3053_s1 }
   0x3   :  { %3086 = sst [smem:[#allocation31_spill]] %s3054_s2 }
   0x4   :  { %3087 = sst [smem:[#allocation32_spill]] %s3055_s3 }
   0x5   :  { %3088 = sst [smem:[#allocation33_spill]] %s3056_s4 }
   0x6   :  { %3089 = sst [smem:[#allocation34_spill]] %s3057_s5 }
   0x7   :  { %3090 = sst [smem:[#allocation35_spill]] %s3058_s6 }
   0x8   :  { %12 = vsyncpa [#allocation4], 0 }
   0x9   :  { %14 = vsyncpa [#allocation4 + $0x1], 0 }
   0xa   :  { %15 = vsyncpa [#allocation7], 0 }
   0xb   :  { %16 = vsyncpa [#allocation10], 0 }
   0xc   :  { %17 = vsyncpa [#allocation5], 0 }
   0xd   :  { %19 = vsyncpa [#allocation5 + $0x1], 0 }
   0xe   :  { %20 = vsyncpa [#allocation14], 0 }
   0xf   :  { %22 = vsyncpa [#allocation14 + $0x1], 0  ;;  %s2300_s21 = smov 0   ;;  %s2302_s22 = smov 0  }
  0x10   :  { %s2304_s23 = smov 0   ;;  %s2306_s24 = smov 0  }
  0x11   :  { %s2308_s25 = smov 0   ;;  %s2310_s26 = smov 0  }
  0x12   :  { %s2312_s27 = smov 0   ;;  %s2314_s28 = smov 0  }
  0x13   :  { %s2316_s29 = smov 0   ;;  %s2318_s30 = smov 0  }
  0x14   :  { %s2320_s7 = smov 0  }
  0x15 LB: > { %3091 = sst [smem:[#allocation20_spill]] %s2202_s21  ;;  %s1492_s8 = sadd.s32 4294967295, %s2242_s7   ;;  %s2242_s7 = sphi %s2320_s7, %s28_s7   ;;  %s2238_s30 = sphi %s2318_s30, %s3153_s30   ;;  %s2234_s29 = sphi %s2316_s29, %s3152_s29   ;;  %s2230_s28 = sphi %s2314_s28, %s3151_s28   ;;  %s2226_s27 = sphi %s2312_s27, %s3150_s27   ;;  %s2222_s26 = sphi %s2310_s26, %s3149_s26   ;;  %s2218_s25 = sphi %s2308_s25, %s3148_s25   ;;  %s2214_s24 = sphi %s2306_s24, %s3147_s24   ;;  %s2210_s23 = sphi %s2304_s23, %s3146_s23   ;;  %s2206_s22 = sphi %s2302_s22, %s3145_s22   ;;  %s2202_s21 = sphi %s2300_s21, %s3143_s21  }
  0x16   : > { %3092 = sst [smem:[#allocation21_spill]] %s2206_s22  ;;  %s1493_s9 = sadd.s32 4294967294, %s2242_s7  }
  0x17   : > { %3093 = sst [smem:[#allocation22_spill]] %s2214_s24  ;;  %p60_p0 = scmp.ne.s32.totalorder %s2218_s25, %s2214_s24 }
  0x18   : > { %3094 = sst [smem:[#allocation23_spill]] %s2226_s27  ;;  %p2359_p1 = scmp.eq.s32.totalorder %s1492_s8, 0 }
  0x19   : > { %3095 = sst [smem:[#allocation24_spill]] %s2230_s28  ;;  %p169_p2 = scmp.ne.s32.totalorder %s2210_s23, %s2206_s22 }
  0x1a   : > { %s3096_s10 = scalar_select %p2359_p1, 1, 0 }
  0x1b   : > { %p2365_p3 = scmp.eq.s32.totalorder %s1492_s8, 3  ;;  %p2371_p4 = por %p2359_p1, %p60_p0 }
  0x1c   : > { %3097 = sst [smem:[#allocation25_spill]] %s3096_s10  ;;  %p175_p5 = scmp.ne.s32.totalorder %s2206_s22, %s2202_s21 }
  0x1d   : > { %s3098_s11 = scalar_select %p2365_p3, 1, 0 }
  0x1e   : > { %s3099_s12 = scalar_select %p2371_p4, 1, 0 }
  0x1f   : > { %p2379_p6 = por %p2365_p3, %p169_p2  ;;  %p176_p7 = scmp.eq.s32.totalorder %s1493_s9, 3 }
  0x20   : > { %p1494_p8 = scmp.ge.s32.totalorder %s2242_s7, 1  ;;  %p209_p9 = scmp.lt.s32.totalorder %s2242_s7, 5 }
  0x21   : > { %s3100_s13 = scalar_select %p2379_p6, 1, 0 }
  0x22   : > { %p2385_p10 = por %p176_p7, %p175_p5  ;;  %p2389_p11 = por %p176_p7, %p60_p0 }
  0x23   : > { %3101 = sst [smem:[#allocation26_spill]] %s3100_s13  ;;  %p2393_p12 = pnand %p1494_p8, %p209_p9 }
  0x24   : > { %s3102_s14 = scalar_select %p2385_p10, 1, 0 }
  0x25   : > { %s3104_s15 = scalar_select %p2389_p11, 1, 0 }
  0x26   : > { %3103 = sst [smem:[#allocation27_spill]] %s3102_s14  ;;  %p1762_p13 = pneg %p2393_p12 }
  0x27   : > { %3105 = sst [smem:[#allocation28_spill]] %s3104_s15  ;;  %s2244_s17 = smov [#allocation6]  }
  0x28   : > { %s3106_s16 = scalar_select %p2393_p12, 1, 0 }
  0x29   : > { %s221_s18 = sshll.u32 %s2244_s17, 4  ;;  %p2401_p2 = pnand %p1762_p13, %p2359_p1  ;;  %s222_s18 = int_to_ptr.vmem [resolvable:$true] %s221_s18 }
  0x2a   : > { %s2245_s20 = smov [#allocation9]   ;;  %s3108_s1 = sld [smem:[#allocation30_spill]] }
  0x2b   : > { %s245_s8 = sshll.u32 %s2245_s20, 4  ;;  %p2413_p5 = pneg %p2401_p2  ;;  %s246_s8 = int_to_ptr.vmem [resolvable:$true] %s245_s8 }
  0x30   : > { %s1938_s24 = scalar_lea.hbm %s3108_s1, 1024 }
  0x31   : > { %p1939_p0 = scmp.ne.s32.totalorder %s3108_s1, %s1938_s24  ;;  %p1945_p9 = scmp.lt.u32.totalorder %s1938_s24, %s3108_s1 }
  0x33   : > { %p1941_p7 = pnand %p2413_p5, %p1939_p0 }
  0x35   : > { %p1942_p8 = pneg %p1941_p7 }
  0x37   : > { %p1947_p13 = pnand %p1945_p9, %p1942_p8 }
  0x39   : > { %1950 = shalt.err (!%p1947_p13)
}
  0x3a   : > { %s1951_s15 = scalar_lea.vmem %s222_s18, 1024  ;;  %p1959_p1 = scmp.lt.s32.totalorder %s222_s18, %s222_s18 }
  0x3b   : > { %p1952_p11 = scmp.ne.s32.totalorder %s222_s18, %s1951_s15  ;;  %p1960_p4 = scmp.lt.s32.totalorder %s1951_s15, %s1951_s15 }
  0x3d   : > { %p1954_p10 = pnand %p1952_p11, %p2413_p5  ;;  %p1961_p12 = por %p1960_p4, %p1959_p1 }
  0x3f   : > { %p1955_p6 = pneg %p1954_p10 }
  0x41   : > { %p1962_p3 = pnand %p1961_p12, %p1955_p6 }
  0x43   : > { %1965 = shalt.err (!%p1962_p3)
}
  0x44   : > { %s3079_s21 = smov 64   ;;  %s3080_s14 = smov 4  }
  0x45   : > { %1765 = dma.hbm_to_vmem [thread:$0]  (!%p2401_p2), %s3108_s1, 1024, %s222_s18, [#allocation7], %s3079_s21, %s3079_s21, %s3080_s14  }
  0x46   : > { %s2248_s24 = smov [#allocation8]   ;;  %s3110_s3 = sld [smem:[#allocation32_spill]] }
  0x47   : > { %s235_s20 = sshll.u32 %s2248_s24, 4  ;;  %s236_s20 = int_to_ptr.vmem [resolvable:$true] %s235_s20 }
  0x4c   : > { %s1966_s13 = scalar_lea.hbm %s3110_s3, 1024 }
  0x4d   : > { %p1967_p1 = scmp.ne.s32.totalorder %s3110_s3, %s1966_s13  ;;  %p1973_p6 = scmp.lt.u32.totalorder %s1966_s13, %s3110_s3 }
  0x4f   : > { %p1969_p3 = pnand %p1967_p1, %p2413_p5 }
  0x51   : > { %p1970_p4 = pneg %p1969_p3 }
  0x53   : > { %p1975_p10 = pnand %p1973_p6, %p1970_p4 }
  0x55   : > { %1978 = shalt.err (!%p1975_p10)
}
  0x56   : > { %s1979_s18 = scalar_lea.vmem %s246_s8, 1024  ;;  %p1987_p7 = scmp.lt.s32.totalorder %s246_s8, %s246_s8 }
  0x57   : > { %p1980_p11 = scmp.ne.s32.totalorder %s246_s8, %s1979_s18  ;;  %p1988_p8 = scmp.lt.s32.totalorder %s1979_s18, %s1979_s18 }
  0x59   : > { %p1982_p12 = pnand %p1980_p11, %p2413_p5  ;;  %p1989_p9 = por %p1988_p8, %p1987_p7 }
  0x5b   : > { %p1983_p0 = pneg %p1982_p12 }
  0x5d   : > { %p1990_p13 = pnand %p1989_p9, %p1983_p0 }
  0x5f   : > { %1993 = shalt.err (!%p1990_p13)
}
  0x60   : > { %1771 = dma.hbm_to_vmem [thread:$0]  (!%p2401_p2), %s3110_s3, 1024, %s246_s8, [#allocation10], %s3079_s21, %s3079_s21, %s3080_s14  }
  0x61   : > { %s3111_s2 = sld [smem:[#allocation31_spill]] }
  0x67   : > { %s1994_s13 = scalar_lea.hbm %s3111_s2, 16 }
  0x68   : > { %p1995_p1 = scmp.ne.s32.totalorder %s3111_s2, %s1994_s13  ;;  %p2001_p6 = scmp.lt.u32.totalorder %s1994_s13, %s3111_s2 }
  0x6a   : > { %p1997_p3 = pnand %p1995_p1, %p2413_p5 }
  0x6c   : > { %p1998_p4 = pneg %p1997_p3 }
  0x6e   : > { %p2003_p10 = pnand %p2001_p6, %p1998_p4 }
  0x70   : > { %2006 = shalt.err (!%p2003_p10)
}
  0x71   : > { %s2007_s15 = scalar_lea.vmem %s236_s20, 16  ;;  %s2014_s8 = scalar_lea.vmem %s236_s20, 32 }
  0x72   : > { %p2008_p11 = scmp.ne.s32.totalorder %s236_s20, %s2007_s15  ;;  %p2015_p7 = scmp.lt.s32.totalorder %s236_s20, %s236_s20 }
  0x73   : > { %p2016_p8 = scmp.lt.s32.totalorder %s2014_s8, %s2007_s15 }
  0x74   : > { %p2010_p12 = pnand %p2008_p11, %p2413_p5 }
  0x75   : > { %p2017_p9 = por %p2016_p8, %p2015_p7 }
  0x76   : > { %p2011_p0 = pneg %p2010_p12 }
  0x78   : > { %p2018_p13 = pnand %p2017_p9, %p2011_p0 }
  0x7a   : > { %2021 = shalt.err (!%p2018_p13)
}
  0x7b   : > { %1768 = dma.hbm_to_vmem [thread:$0]  (!%p2401_p2), %s3111_s2, 16, %s236_s20, [#allocation7]  }
  0x7c   : > { %s2249_s27 = smov [#allocation11]   ;;  %s3112_s4 = sld [smem:[#allocation33_spill]] }
  0x7d   : > { %s259_s28 = sshll.u32 %s2249_s27, 4  ;;  %s260_s28 = int_to_ptr.vmem [resolvable:$true] %s259_s28 }
  0x82   : > { %s2022_s5 = scalar_lea.hbm %s3112_s4, 16 }
  0x83   : > { %p2023_p1 = scmp.ne.s32.totalorder %s3112_s4, %s2022_s5  ;;  %p2029_p6 = scmp.lt.u32.totalorder %s2022_s5, %s3112_s4 }
  0x85   : > { %p2025_p3 = pnand %p2023_p1, %p2413_p5 }
  0x87   : > { %p2026_p4 = pneg %p2025_p3 }
  0x89   : > { %p2031_p10 = pnand %p2029_p6, %p2026_p4 }
  0x8b   : > { %2034 = shalt.err (!%p2031_p10)
}
  0x8c   : > { %s2035_s20 = scalar_lea.vmem %s260_s28, 16  ;;  %s2042_s8 = scalar_lea.vmem %s260_s28, 32 }
  0x8d   : > { %p2036_p11 = scmp.ne.s32.totalorder %s260_s28, %s2035_s20  ;;  %p2043_p7 = scmp.lt.s32.totalorder %s260_s28, %s260_s28 }
  0x8e   : > { %p2044_p8 = scmp.lt.s32.totalorder %s2042_s8, %s2035_s20 }
  0x8f   : > { %p2038_p12 = pnand %p2036_p11, %p2413_p5 }
  0x90   : > { %p2045_p9 = por %p2044_p8, %p2043_p7 }
  0x91   : > { %p2039_p0 = pneg %p2038_p12 }
  0x93   : > { %p2046_p13 = pnand %p2045_p9, %p2039_p0 }
  0x95   : > { %2049 = shalt.err (!%p2046_p13)
}
  0x96   : > { %1774 = dma.hbm_to_vmem [thread:$0]  (!%p2401_p2), %s3112_s4, 16, %s260_s28, [#allocation10]  }
  0x97   : > { %s37_s17 = sadd.s32 1, %s2234_s29  ;;  %s40_s27 = sadd.s32 1, %s2238_s30 }
  0x98   : > { %p38_p5 = scmp.ge.s32.totalorder %s37_s17, 2  ;;  %s47_s19 = sadd.s32 1, %s2222_s26 }
  0x99   : > { %p54_p1 = scmp.ne.s32.totalorder %s2222_s26, %s2218_s25  ;;  %p55_p3 = scmp.eq.s32.totalorder %s2242_s7, 0 }
  0x9a   : > { %s3155_s17 = smov (%p38_p5, %s37_s17), 0  ;;  %s3157_s27 = smov (!%p38_p5, %s40_s27), %s2238_s30 }
  0x9b   : > { %p2498_p4 = por %p55_p3, %p54_p1  ;;  %s155_s28 = ssub.s32 %s2234_s29, %s3155_s17 }
  0x9c   : > { %p42_p2 = scmp.ge.s32.totalorder %s3157_s27, 2  ;;  %s159_s13 = sadd.s32 1, %s2210_s23 }
  0x9d   : > { %p3114_p6 = scmp.ne.s32.totalorder %s3098_s11, 0  ;;  %p1790_p11 = scmp.lt.s32.totalorder %s2242_s7, 4 }
  0x9e   : > { %s3159_s27 = smov (%p42_p2, %s3157_s27), 0  ;;  %s270_s6 = sand.u32 1, %s2222_s26  }
  0x9f   : > { %p2507_p10 = por %p3114_p6, %p54_p1  ;;  %s1738_s24 = smul.u32 3456, %s2238_s30 }
  0xa0   : > { %s44_s9 = ssub.s32 %s2238_s30, %s3159_s27  ;;  %s1737_s20 = smul.u32 216, %s270_s6 }
  0xa1   : > { %p45_p12 = scmp.eq.s32.totalorder %s44_s9, 0  ;;  %s156_s15 = sor.u32 %s155_s28, %s44_s9 }
  0xa2   : > { %p157_p0 = scmp.eq.s32.totalorder %s156_s15, 0  ;;  %s3116_s0 = sld [smem:[#allocation29_spill]] }
  0xa3   : > { %s2519_s8 = scalar_select %p45_p12, %s2222_s26, %s47_s19  }
  0xa4   : > { %s2522_s11 = scalar_select %p157_p0, %s2210_s23, %s159_s13  }
  0xa5   : > { %s274_s14 = scalar_lea.vmem [#allocation3], %s1737_s20  ;;  %p2533_p7 = pnand %p1790_p11, %p2498_p4 }
  0xa6   : > { %s281_s1 = sshll.u32 %s274_s14, 4  ;;  %s2539_s19 = scalar_lea.sflag [#allocation4], %s270_s6  ;;  %s2537_s1 = int_to_ptr.vmem [resolvable:$true] %s281_s1 }
  0xa7   : > { %p2052_p9 = pneg %p2533_p7 }
  0xa8   : > { %s2527_s21 = scalar_lea.hbm %s3116_s0, %s1738_s24  ;;  %s2055_s24 = scalar_lea.hbm %s3116_s0, 6912 }
  0xa9   : > { %s2050_s13 = scalar_lea.hbm %s2527_s21, 3456  ;;  %p2056_p1 = scmp.lt.u32.totalorder %s2527_s21, %s3116_s0 }
  0xaa   : > { %p2051_p8 = scmp.ne.s32.totalorder %s2527_s21, %s2050_s13  ;;  %p2057_p3 = scmp.lt.u32.totalorder %s2055_s24, %s2050_s13 }
  0xab   : > { %p2059_p2 = scmp.lt.u32.totalorder %s2050_s13, %s2527_s21 }
  0xac   : > { %p2053_p13 = pnand %p2052_p9, %p2051_p8  ;;  %p2058_p4 = por %p2057_p3, %p2056_p1 }
  0xae   : > { %p2054_p5 = pneg %p2053_p13  ;;  %p2060_p6 = por %p2059_p2, %p2058_p4 }
  0xb0   : > { %p2061_p11 = pnand %p2060_p6, %p2054_p5 }
  0xb2   : > { %2064 = shalt.err (!%p2061_p11)
}
  0xb3   : > { %s2065_s6 = scalar_lea.vmem %s2537_s1, 3456  ;;  %s2250_s20 = smov [#allocation3]  }
  0xb4   : > { %p2066_p12 = scmp.ne.s32.totalorder %s2537_s1, %s2065_s6  ;;  %s2070_s18 = sshll.u32 %s2250_s20, 4  ;;  %s2071_s18 = int_to_ptr.vmem [resolvable:$false] %s2070_s18 }
  0xb5   : > { %s2072_s22 = scalar_lea.vmem %s2071_s18, 6912  ;;  %p2073_p13 = scmp.lt.s32.totalorder %s2537_s1, %s2071_s18 }
  0xb6   : > { %p2068_p0 = pnand %p2066_p12, %p2052_p9  ;;  %p2074_p1 = scmp.lt.s32.totalorder %s2072_s22, %s2065_s6 }
  0xb8   : > { %p2069_p8 = pneg %p2068_p0  ;;  %p2075_p3 = por %p2074_p1, %p2073_p13 }
  0xba   : > { %p2076_p4 = pnand %p2075_p3, %p2069_p8 }
  0xbc   : > { %2079 = shalt.err (!%p2076_p4)
}
  0xbd   : > { %s3118_s13 = smov 4   ;;  %s3119_s14 = smov 64  }
  0xbe   : > { %1778 = dma.hbm_to_vmem [thread:$0]  (!%p2533_p7), %s2527_s21, 3456, %s2537_s1, %s2539_s19, %s3119_s14, %s3119_s14, %s3118_s13  }
  0xbf   : > { %p3120_p9 = scmp.ne.s32.totalorder %s3106_s16, 0 }
  0xc0   : > { %s2573_s10 = sand.u32 (!%p3120_p9), 1, %s2218_s25   ;;  %p3121_p5 = scmp.ne.s32.totalorder (!%p3120_p9), %s3099_s12, 0 }
  0xc1   : > { %293 = sbr.rel (%p3120_p9) target bundleno = 1012 (0x3f4), region = 40  ;;  %s296_s9 = scalar_lea.sflag (!%p3120_p9), [#allocation4], %s2573_s10 }
  0xc2   : > { %s1739_s24 = smul.u32 (!%p3120_p9), 216, %s2573_s10 }
  0xc4   : > { %s299_s15 = scalar_lea.vmem (!%p3120_p9), [#allocation3], %s1739_s24 }
  0xc8   : > { %2181 = dma.done.wait (%p3121_p5), %s296_s9, 3456  }
  0xc9   : > { %2183 = vsyncadd (%p3121_p5), %s296_s9, 4294963840  ;;  %s3122_s28 = sld [smem:[#allocation25_spill]] }
  0xcf   : > { %p3123_p2 = scmp.ne.s32.totalorder %s3122_s28, 0 }
  0xd1   : > { %2185 = dma.done.wait (%p3123_p2), [#allocation7], 1040  }
  0xd2   : > { %2187 = vsyncadd (%p3123_p2), [#allocation7], 4294966256 }
  0xd3   : > { %2189 = dma.done.wait (%p3123_p2), [#allocation10], 1040  }
  0xd4   : > { %2191 = vsyncadd (%p3123_p2), [#allocation10], 4294966256  ;;  %s3124_s1 = sld [smem:[#allocation23_spill]]  ;;  %vm561_vm0 = vcmask 1046528   ;;  %s2251_s12 = smov 12   ;;  %vm744_vm2 = vcmask 31744  }
  0xd5   : > { %vm448_vm1 = vsmask.f32 7424  ;;  %s2252_s19 = smov 8   ;;  %s3082_s6 = smov 4   ;;  %vm761_vm3 = vcmask 64512   ;;  %vm795_vm4 = vcmask 130048  }
  0xd6   : > { %s2254_s20 = smov 16   ;;  %s2255_s18 = smov 20   ;;  %vm778_vm5 = vcmask 97280   ;;  %vm812_vm6 = vcmask 162816   ;;  %vm829_vm7 = vcmask 195584   ;;  %vm846_vm8 = vcmask 228352  }
  0xd7   : > { %s2256_s22 = smov 24   ;;  %s2257_s13 = smov 28   ;;  %vm863_vm9 = vcmask 261120   ;;  %vm880_vm10 = vcmask 293888  }
  0xd8   : > { %s2258_s14 = smov 32   ;;  %s3125_s24 = sld [smem:[#allocation21_spill]] }
  0xda   : > { %s1580_s16 = smul.u32 96, %s3124_s1  ;;  %p1563_p7 = scmp.ne.s32.totalorder %s3124_s1, 0 }
  0xdc   : > { %s2590_s21 = scalar_lea.vmem %s299_s15, %s1580_s16 [#allocation3]  ;;  %s3081_s16 = scalar_lea.vmem [#allocation13], %s2573_s10 }
  0xdd   : > { %v2593_v0 = vld [vmem:[%s2590_s21 + $0x3c] sm:$0xff]   ;;  %v2596_v1 = vld [vmem:[%s2590_s21 + $0xc] sm:$0xff]   ;;  %v1905_v3 = vld [vmem:[%s2590_s21 + $0x38] ss:$0 sps:$4 sm:$0x11]  }
  0xde   : > { %615 = vrot.lane.b32.xlu1 %v2593_v0, %s2251_s12  ;;  %607 = vrot.lane.b32.xlu0 %v2596_v1, %s2251_s12  ;;  %v2603_v2 = vld [vmem:[%s2590_s21 + $0x30] sm:$0xff]   ;;  %v2607_v4 = vld [vmem:[%s2590_s21] sm:$0xff]   ;;  %v577_v5 = vrot.slane %v2593_v0, 1  ;;  %v575_v7 = vrot.slane %v1905_v3, 1  ;;  %v565_v9 = vrot.slane %v2596_v1, 1  ;;  %v462_v16 = vshrl.u32 %v2596_v1, 16 }
  0xdf   : > { %v574_v6 = vrot.slane %v2603_v2, 1  ;;  %v1907_v8 = vld [vmem:[%s2590_s21 + $0x8] ss:$0 sps:$4 sm:$0x11]   ;;  %v562_v10 = vrot.slane %v2607_v4, 1  ;;  %v464_v17 = vshll.u32 %v2596_v1, 16 }
  0xe0   : > { %v1908_v11 = vld [vmem:[%s2590_s21 + $0x44] ss:$0 sps:$4 sm:$0x11]   ;;  %v563_v13 = vrot.slane %v1907_v8, 1  ;;  %v450_v18 = vshrl.u32 %v2607_v4, 16  ;;  %v452_v22 = vshll.u32 %v2607_v4, 16 }
  0xe1   : > { %v2616_v12 = vsel %vm561_vm0, %v574_v6, %v575_v7  ;;  %v1909_v14 = vld [vmem:[%s2590_s21 + $0x14] ss:$0 sps:$4 sm:$0x11]   ;;  %v578_v15 = vrot.slane %v1908_v11, 1  ;;  %v466_v24 = vrot.slane %v464_v17, 1  ;;  %v457_v25 = vshll.u32 %v1907_v8, 16 }
  0xe2   : > { %594 = vrot.lane.b32.xlu1 %v2616_v12, %s2252_s19  ;;  %v564_v19 = vsel %vm561_vm0, %v562_v10, %v563_v13  ;;  %v566_v20 = vrot.slane %v1909_v14, 1  ;;  %v469_v21 = vshll.u32 %v1909_v14, 16  ;;  %v510_v26 = vshrl.u32 %v2593_v0, 16  ;;  %v2640_v39 = vld [vmem:[%s2590_s21 + $0x48] sm:$0xff]   ;;  %v2647_v46 = vld [vmem:[%s2590_s21 + $0x18] sm:$0xff]   ;;  %v2671_v58 = vld [vmem:[%s2590_s21 + $0x60] sm:$0xff]  }
  0xe3   : > { %586 = vrot.lane.b32.xlu0 %v564_v19, %s2252_s19  ;;  %v2628_v23 = vsel %vm561_vm0, %v577_v5, %v578_v15  ;;  %v454_v29 = vrot.slane %v452_v22, 1  ;;  %v512_v30 = vshll.u32 %v2593_v0, 16  ;;  %v467_v31 = vor.u32 %v466_v24, %v462_v16  ;;  %v2650_v47 = vld [vmem:[%s2590_s21 + $0x50] ss:$0 sps:$4 sm:$0x11]   ;;  %v1923_v22 = vld [vmem:[#allocation6 + $0x8] sm:$0xff]  }
  0xe4   : > { %v2632_v27 = vsel %vm561_vm0, %v565_v9, %v566_v20  ;;  %v471_v28 = vrot.slane %v469_v21, 1  ;;  %v459_v32 = vrot.slane %v457_v25, 1  ;;  %v517_v33 = vshll.u32 %v1908_v11, 16  ;;  %v2654_v48 = vld [vmem:[%s2590_s21 + $0x20] ss:$0 sps:$4 sm:$0x11]  }
  0xe5   : > { %v498_v34 = vshrl.u32 %v2603_v2, 16  ;;  %v455_v35 = vor.u32 %v454_v29, %v450_v18  ;;  %v514_v36 = vrot.slane %v512_v30, 1  ;;  %v500_v37 = vshll.u32 %v2603_v2, 16  ;;  %v2679_v63 = vld [vmem:[%s2590_s21 + $0x6c] sm:$0xff]   ;;  %s339_s9 = sand.u32 1, %s3125_s24  }
  0xe6   : > { %596 = vrot.lane.b32.xlu1 %v2628_v23, %s2252_s19  ;;  %v505_v38 = vshll.u32 %v1905_v3, 16  ;;  %v472_v40 = vsel %vm448_vm1, %v467_v31, %v471_v28  ;;  %v519_v41 = vrot.slane %v517_v33, 1  ;;  %v524_v51 = vshll.u32 %v2640_v39, 16  ;;  %v1922_v3 = vld [vmem:[#allocation6] sm:$0xff]   ;;  %s1506_s15 = sshll.u32 %s339_s9, 6 }
  0xe7   : > { %588 = vrot.lane.b32.xlu0 %v2632_v27, %s2252_s19  ;;  %v460_v42 = vsel %vm448_vm1, %v455_v35, %v459_v32  ;;  %v515_v43 = vor.u32 %v514_v36, %v510_v26  ;;  %v502_v44 = vrot.slane %v500_v37, 1  ;;  %v476_v53 = vshll.u32 %v2647_v46, 16  ;;  %v1919_v6 = vld [vmem:[%s2590_s21 + $0x68] ss:$0 sps:$4 sm:$0x11]   ;;  %1669 = vmatprep.subr.bf16.mxu0 %v1922_v3  ;;  %s2930_s28 = scalar_lea.vmem [#allocation12], %s1506_s15 }
  0xe8   : > { %v507_v45 = vrot.slane %v505_v38, 1  ;;  %v529_v54 = vshll.u32 %v2650_v47, 16  ;;  %v481_v55 = vshll.u32 %v2654_v48, 16  ;;  %v522_v56 = vshrl.u32 %v2640_v39, 16  ;;  %1721 = vmatprep.subr.bf16.mxu1 %v1922_v3  ;;  %1670 = vmatpush3.bf16.msra.mxu0 %v1922_v3  ;;  %v1924_v38 = vld [vmem:[#allocation6 + $0x10] sm:$0xff]  }
  0xe9   : > { %v2657_v49 = vsel %vm448_vm1, %v515_v43, %v519_v41  ;;  %v503_v50 = vor.u32 %v502_v44, %v498_v34  ;;  %v526_v57 = vrot.slane %v524_v51, 1  ;;  %v474_v59 = vshrl.u32 %v2647_v46, 16  ;;  %v1921_v16 = vld [vmem:[%s2590_s21 + $0x74] ss:$0 sps:$4 sm:$0x11]   ;;  %1729 = vmatpush3.bf16.msra.mxu1 %v1922_v3  ;;  %1671 = vmatprep.subr.bf16.mxu0 %v1923_v22  ;;  %v1925_v41 = vld [vmem:[#allocation6 + $0x18] sm:$0xff]  }
  0xea   : > { %547 = vrot.lane.b32.xlu1 %v472_v40, %s3082_s6  ;;  %v478_v60 = vrot.slane %v476_v53, 1  ;;  %v531_v61 = vrot.slane %v529_v54, 1  ;;  %v483_v62 = vrot.slane %v481_v55, 1  ;;  %v627_v7 = vshrl.u32 %v2671_v58, 16  ;;  %1722 = vmatprep.subr.bf16.mxu1 %v1923_v22  ;;  %v2726_v43 = vld [vmem:[%s2590_s21 + $0x54] sm:$0xff]  }
  0xeb   : > { %545 = vrot.lane.b32.xlu0 %v460_v42, %s3082_s6  ;;  %v2662_v52 = vsel %vm448_vm1, %v503_v50, %v507_v45  ;;  %v527_v5 = vor.u32 %v526_v57, %v522_v56  ;;  %v629_v8 = vshll.u32 %v2671_v58, 16  ;;  %v654_v9 = vrot.slane %v2671_v58, 1  ;;  %v2734_v45 = vld [vmem:[%s2590_s21 + $0x24] sm:$0xff]   ;;  %v1927_v53 = vld [vmem:[#allocation6 + $0x28] sm:$0xff]  }
  0xec   : > { %v698_v10 = vshrl.u32 %v2679_v63, 16  ;;  %v479_v11 = vor.u32 %v478_v60, %v474_v59  ;;  %v634_v14 = vshll.u32 %v1919_v6, 16  ;;  %v655_v15 = vrot.slane %v1919_v6, 1  ;;  %1672 = vmatpush3.bf16.msra.mxu0 %v1923_v22 }
  0xed   : > { %v631_v13 = vrot.slane %v629_v8, 1  ;;  %v700_v17 = vshll.u32 %v2679_v63, 16  ;;  %v725_v18 = vrot.slane %v2679_v63, 1  ;;  %v2694_v19 = vsel %vm448_vm1, %v527_v5, %v531_v61  ;;  %1730 = vmatpush3.bf16.msra.mxu1 %v1923_v22  ;;  %1673 = vmatprep.subr.bf16.mxu0 %v1924_v38  ;;  %v1928_v61 = vld [vmem:[#allocation6 + $0x30] sm:$0xff]  }
  0xee   : > { %555 = vrot.lane.b32.xlu1 %v2657_v49, %s3082_s6  ;;  %v636_v21 = vrot.slane %v634_v14, 1  ;;  %v2698_v24 = vsel %vm561_vm0, %v654_v9, %v655_v15  ;;  %v705_v26 = vshll.u32 %v1921_v16, 16  ;;  %v726_v28 = vrot.slane %v1921_v16, 1  ;;  %1723 = vmatprep.subr.bf16.mxu1 %v1924_v38 }
  0xef   : > { %553 = vrot.lane.b32.xlu0 %v2662_v52, %s3082_s6  ;;  %v632_v20 = vor.u32 %v631_v13, %v627_v7  ;;  %v702_v25 = vrot.slane %v700_v17, 1  ;;  %v2701_v29 = vsel %vm448_vm1, %v479_v11, %v483_v62  ;;  %v580_v30 = vrot.slane %v2640_v39, 1  ;;  %v1929_v7 = vld [vmem:[#allocation6 + $0x38] sm:$0xff]  }
  0xf0   : > { %v581_v31 = vrot.slane %v2650_v47, 1  ;;  %v568_v33 = vrot.slane %v2647_v46, 1  ;;  %v707_v35 = vrot.slane %v705_v26, 1  ;;  %v2712_v36 = vsel %vm561_vm0, %v725_v18, %v726_v28  ;;  %1674 = vmatpush3.bf16.msra.mxu0 %v1924_v38  ;;  %v1926_v47 = vld [vmem:[#allocation6 + $0x20] sm:$0xff]  }
  0xf1   : > { %v2706_v32 = vsel %vm448_vm1, %v632_v20, %v636_v21  ;;  %v703_v34 = vor.u32 %v702_v25, %v698_v10  ;;  %v569_v37 = vrot.slane %v2654_v48, 1  ;;  %1731 = vmatpush3.bf16.msra.mxu1 %v1924_v38  ;;  %1675 = vmatprep.subr.bf16.mxu0 %v1925_v41  ;;  %v1916_v48 = vld [vmem:[%s2590_s21 + $0x5c] ss:$0 sps:$4 sm:$0x11]   ;;  %v536_v50 = vshll.u32 %v2726_v43, 16 }
  0xf2   : > { %617 = vrot.lane.b32.xlu1 %v2640_v39, %s2251_s12  ;;  %v2723_v42 = vsel %vm561_vm0, %v580_v30, %v581_v31  ;;  %1724 = vmatprep.subr.bf16.mxu1 %v1925_v41  ;;  %v488_v51 = vshll.u32 %v2734_v45, 16  ;;  %v534_v54 = vshrl.u32 %v2726_v43, 16  ;;  %v541_v56 = vshll.u32 %v1916_v48, 16 }
  0xf3   : > { %609 = vrot.lane.b32.xlu0 %v2647_v46, %s2251_s12  ;;  %v2731_v44 = vsel %vm561_vm0, %v568_v33, %v569_v37  ;;  %v538_v55 = vrot.slane %v536_v50, 1  ;;  %v486_v57 = vshrl.u32 %v2734_v45, 16  ;;  %v583_v10 = vrot.slane %v2726_v43, 1 }
  0xf4   : > { %1676 = vmatpush3.bf16.msra.mxu0 %v1925_v41  ;;  %v490_v59 = vrot.slane %v488_v51, 1  ;;  %v543_v3 = vrot.slane %v541_v56, 1  ;;  %v584_v11 = vrot.slane %v1916_v48, 1  ;;  %v571_v13 = vrot.slane %v2734_v45, 1 }
  0xf5   : > { %1732 = vmatpush3.bf16.msra.mxu1 %v1925_v41  ;;  %1677 = vmatprep.subr.bf16.mxu0 %v1926_v47  ;;  %v539_v62 = vor.u32 %v538_v55, %v534_v54 }
  0xf6   : > { %646 = vrot.lane.b32.xlu1 %v2657_v49, %s2254_s20  ;;  %1725 = vmatprep.subr.bf16.mxu1 %v1926_v47  ;;  %v491_v5 = vor.u32 %v490_v59, %v486_v57  ;;  %v585_v15 = vsel %vm561_vm0, %v583_v10, %v584_v11 }
  0xf7   : > { %638 = vrot.lane.b32.xlu0 %v472_v40, %s2254_s20  ;;  %v2718_v40 = vsel %vm448_vm1, %v703_v34, %v707_v35  ;;  %v544_v8 = vsel %vm448_vm1, %v539_v62, %v543_v3 }
  0xf8   : > { %1678 = vmatpush3.bf16.msra.mxu0 %v1926_v47 }
  0xf9   : > { %1733 = vmatpush3.bf16.msra.mxu1 %v1926_v47  ;;  %1679 = vmatprep.subr.bf16.mxu0 %v1927_v53 }
  0xfa   : > { %648 = vrot.lane.b32.xlu1 %v2694_v19, %s2254_s20  ;;  %1726 = vmatprep.subr.bf16.mxu1 %v1927_v53 }
  0xfb   : > { %640 = vrot.lane.b32.xlu0 %v2701_v29, %s2254_s20 }
  0xfc   : > { %1680 = vmatpush3.bf16.msra.mxu0 %v1927_v53 }
  0xfd   : > { %1734 = vmatpush3.bf16.msra.mxu1 %v1927_v53  ;;  %1681 = vmatprep.subr.bf16.mxu0 %v1928_v61 }
  0xfe   : > { %665 = vrot.lane.b32.xlu1 %v2628_v23, %s2255_s18  ;;  %1727 = vmatprep.subr.bf16.mxu1 %v1928_v61 }
  0xff   : > { %657 = vrot.lane.b32.xlu0 %v2632_v27, %s2255_s18  ;;  %v1917_v27 = vld [vmem:[%s2590_s21 + $0x2c] ss:$0 sps:$4 sm:$0x11]  }
 0x100   : > { %v493_v60 = vshll.u32 %v1917_v27, 16  ;;  %1682 = vmatpush3.bf16.msra.mxu0 %v1928_v61  ;;  %v572_v14 = vrot.slane %v1917_v27, 1 }
 0x101   : > { %1735 = vmatpush3.bf16.msra.mxu1 %v1928_v61  ;;  %1683 = vmatprep.subr.bf16.mxu0 %v1929_v7 }
 0x102   : > { %667 = vrot.lane.b32.xlu1 %v2723_v42, %s2255_s18  ;;  %v495_v6 = vrot.slane %v493_v60, 1  ;;  %1728 = vmatprep.subr.bf16.mxu1 %v1929_v7  ;;  %v573_v16 = vsel %vm561_vm0, %v571_v13, %v572_v14 }
 0x103   : > { %659 = vrot.lane.b32.xlu0 %v2731_v44, %s2255_s18 }
 0x104   : > { %v496_v9 = vsel %vm448_vm1, %v491_v5, %v495_v6  ;;  %1684 = vmatpush3.bf16.msra.mxu0 %v1929_v7 }
 0x105   : > { %1736 = vmatpush3.bf16.msra.mxu1 %v1929_v7 }
 0x106   : > { %686 = vrot.lane.b32.xlu1 %v2640_v39, %s2256_s22 }
 0x107   : > { %678 = vrot.lane.b32.xlu0 %v2647_v46, %s2256_s22 }
 0x10a   : > { %688 = vrot.lane.b32.xlu1 %v2726_v43, %s2256_s22 }
 0x10b   : > { %680 = vrot.lane.b32.xlu0 %v2734_v45, %s2256_s22 }
 0x10e   : > { %717 = vrot.lane.b32.xlu1 %v2694_v19, %s2257_s13 }
 0x10f   : > { %709 = vrot.lane.b32.xlu0 %v2701_v29, %s2257_s13 }
 0x112   : > { %719 = vrot.lane.b32.xlu1 %v544_v8, %s2257_s13 }
 0x113   : > { %711 = vrot.lane.b32.xlu0 %v496_v9, %s2257_s13 }
 0x116   : > { %736 = vrot.lane.b32.xlu1 %v2723_v42, %s2258_s14 }
 0x117   : > { %728 = vrot.lane.b32.xlu0 %v2731_v44, %s2258_s14 }
 0x11a   : > { %557 = vrot.lane.b32.xlu1 %v2694_v19, %s3082_s6 }
 0x11b   : > { %549 = vrot.lane.b32.xlu0 %v2701_v29, %s3082_s6 }
 0x11e   : > { %738 = vrot.lane.b32.xlu1 %v585_v15, %s2258_s14 }
 0x11f   : > { %730 = vrot.lane.b32.xlu0 %v573_v16, %s2258_s14 }
 0x122   : > { %559 = vrot.lane.b32.xlu1 %v544_v8, %s3082_s6 }
 0x123   : > { %551 = vrot.lane.b32.xlu0 %v496_v9, %s3082_s6 }
 0x126   : > { %598 = vrot.lane.b32.xlu1 %v2723_v42, %s2252_s19 }
 0x127   : > { %590 = vrot.lane.b32.xlu0 %v2731_v44, %s2252_s19 }
 0x12a   : > { %600 = vrot.lane.b32.xlu1 %v585_v15, %s2252_s19 }
 0x12b   : > { %592 = vrot.lane.b32.xlu0 %v573_v16, %s2252_s19 }
 0x12e   : > { %619 = vrot.lane.b32.xlu1 %v2726_v43, %s2251_s12 }
 0x12f   : > { %611 = vrot.lane.b32.xlu0 %v2734_v45, %s2251_s12 }
 0x132   : > { %621 = vrot.lane.b32.xlu1 %v2671_v58, %s2251_s12 }
 0x133   : > { %613 = vrot.lane.b32.xlu0 %v2603_v2, %s2251_s12 }
 0x136   : > { %650 = vrot.lane.b32.xlu1 %v544_v8, %s2254_s20 }
 0x137   : > { %642 = vrot.lane.b32.xlu0 %v496_v9, %s2254_s20 }
 0x13a   : > { %652 = vrot.lane.b32.xlu1 %v2706_v32, %s2254_s20 }
 0x13b   : > { %644 = vrot.lane.b32.xlu0 %v2662_v52, %s2254_s20 }
 0x13e   : > { %669 = vrot.lane.b32.xlu1 %v585_v15, %s2255_s18 }
 0x13f   : > { %661 = vrot.lane.b32.xlu0 %v573_v16, %s2255_s18 }
 0x142   : > { %671 = vrot.lane.b32.xlu1 %v2698_v24, %s2255_s18 }
 0x143   : > { %663 = vrot.lane.b32.xlu0 %v2616_v12, %s2255_s18 }
 0x146   : > { %690 = vrot.lane.b32.xlu1 %v2671_v58, %s2256_s22 }
 0x147   : > { %682 = vrot.lane.b32.xlu0 %v2603_v2, %s2256_s22 }
 0x14a   : > { %692 = vrot.lane.b32.xlu1 %v2679_v63, %s2256_s22 }
 0x14b   : > { %684 = vrot.lane.b32.xlu0 %v2593_v0, %s2256_s22 }
 0x14e   : > { %721 = vrot.lane.b32.xlu1 %v2706_v32, %s2257_s13 }
 0x14f   : > { %713 = vrot.lane.b32.xlu0 %v2662_v52, %s2257_s13 }
 0x150   : > { %v616_v17 = vpop.permute.xlu1 %615  ;;  %v608_v18 = vpop.permute.xlu0 %607 }
 0x152   : > { %723 = vrot.lane.b32.xlu1 %v2718_v40, %s2257_s13 }
 0x153   : > { %715 = vrot.lane.b32.xlu0 %v2657_v49, %s2257_s13 }
 0x154   : > { %v595_v58 = vpop.permute.xlu1 %594 }
 0x155   : > { %v587_v19 = vpop.permute.xlu0 %586 }
 0x156   : > { %740 = vrot.lane.b32.xlu1 %v2698_v24, %s2258_s14 }
 0x157   : > { %732 = vrot.lane.b32.xlu0 %v2616_v12, %s2258_s14 }
 0x158   : > { %v597_v63 = vpop.permute.xlu1 %596 }
 0x159   : > { %v589_v20 = vpop.permute.xlu0 %588 }
 0x15a   : > { %742 = vrot.lane.b32.xlu1 %v2712_v36, %s2258_s14 }
 0x15b   : > { %734 = vrot.lane.b32.xlu0 %v2628_v23, %s2258_s14 }
 0x15c   : > { %v548_v52 = vpop.permute.xlu1 %547 }
 0x15d   : > { %v546_v21 = vpop.permute.xlu0 %545  ;;  %v748_v61 = vsel %vm744_vm2, %v2596_v1, %v548_v52 }
 0x15e   : > { %v746_v38 = vsel %vm744_vm2, %v2607_v4, %v546_v21  ;;  %v765_v8 = vsel %vm761_vm3, %v748_v61, %v589_v20 }
 0x15f   : > { %v763_v44 = vsel %vm761_vm3, %v746_v38, %v587_v19 }
 0x160   : > { %v556_v22 = vpop.permute.xlu1 %555  ;;  %v780_v50 = vsel %vm778_vm5, %v763_v44, %v608_v18 }
 0x161   : > { %v554_v49 = vpop.permute.xlu0 %553  ;;  %v756_v54 = vsel %vm744_vm2, %v2593_v0, %v556_v22 }
 0x162   : > { %v754_v23 = vsel %vm744_vm2, %v2603_v2, %v554_v49  ;;  %v773_v5 = vsel %vm761_vm3, %v756_v54, %v597_v63 }
 0x163   : > { %v771_v41 = vsel %vm761_vm3, %v754_v23, %v595_v58 }
 0x164   : > { %v618_v25 = vpop.permute.xlu1 %617  ;;  %v788_v47 = vsel %vm778_vm5, %v771_v41, %v616_v17 }
 0x165   : > { %v610_v26 = vpop.permute.xlu0 %609  ;;  %v790_v6 = vsel %vm778_vm5, %v773_v5, %v618_v25 }
 0x166   : > { %v782_v1 = vsel %vm778_vm5, %v765_v8, %v610_v26 }
 0x168   : > { %v647_v28 = vpop.permute.xlu1 %646 }
 0x169   : > { %v639_v29 = vpop.permute.xlu0 %638  ;;  %v805_v2 = vsel %vm795_vm4, %v788_v47, %v647_v28 }
 0x16a   : > { %v797_v51 = vsel %vm795_vm4, %v780_v50, %v639_v29 }
 0x16c   : > { %v649_v24 = vpop.permute.xlu1 %648 }
 0x16d   : > { %v641_v30 = vpop.permute.xlu0 %640  ;;  %v807_v9 = vsel %vm795_vm4, %v790_v6, %v649_v24 }
 0x16e   : > { %v799_v13 = vsel %vm795_vm4, %v782_v1, %v641_v30 }
 0x170   : > { %v666_v31 = vpop.permute.xlu1 %665 }
 0x171   : > { %v658_v12 = vpop.permute.xlu0 %657  ;;  %v822_v4 = vsel %vm812_vm6, %v805_v2, %v666_v31 }
 0x172   : > { %v814_v55 = vsel %vm812_vm6, %v797_v51, %v658_v12 }
 0x174   : > { %v668_v32 = vpop.permute.xlu1 %667 }
 0x175   : > { %v660_v33 = vpop.permute.xlu0 %659  ;;  %v824_v10 = vsel %vm812_vm6, %v807_v9, %v668_v32 }
 0x176   : > { %v816_v15 = vsel %vm812_vm6, %v799_v13, %v660_v33 }
 0x178   : > { %v687_v34 = vpop.permute.xlu1 %686 }
 0x179   : > { %v679_v35 = vpop.permute.xlu0 %678  ;;  %v839_v53 = vsel %vm829_vm7, %v822_v4, %v687_v34 }
 0x17a   : > { %v831_v59 = vsel %vm829_vm7, %v814_v55, %v679_v35 }
 0x17c   : > { %v689_v36 = vpop.permute.xlu1 %688 }
 0x17d   : > { %v681_v37 = vpop.permute.xlu0 %680  ;;  %v841_v14 = vsel %vm829_vm7, %v824_v10, %v689_v36 }
 0x17e   : > { %v833_v18 = vsel %vm829_vm7, %v816_v15, %v681_v37 }
 0x180   : > { %v718_v40 = vpop.permute.xlu1 %717 }
 0x181   : > { %v710_v42 = vpop.permute.xlu0 %709  ;;  %v856_v56 = vsel %vm846_vm8, %v839_v53, %v718_v40 }
 0x182   : > { %v848_v62 = vsel %vm846_vm8, %v831_v59, %v710_v42 }
 0x184   : > { %v720_v48 = vpop.permute.xlu1 %719 }
 0x185   : > { %v712_v27 = vpop.permute.xlu0 %711  ;;  %v858_v16 = vsel %vm846_vm8, %v841_v14, %v720_v48 }
 0x186   : > { %v850_v19 = vsel %vm846_vm8, %v833_v18, %v712_v27 }
 0x188   : > { %v737_v57 = vpop.permute.xlu1 %736 }
 0x189   : > { %v873_v60 = vsel %vm863_vm9, %v856_v56, %v737_v57  ;;  %v729_v3 = vpop.permute.xlu0 %728 }
 0x18a   : > { %1693 = vmatprep.mubr.msk.bf16.mxu1 %vm880_vm10, %v873_v60  ;;  %v865_v0 = vsel %vm863_vm9, %v848_v62, %v729_v3 }
 0x18b   : > { %1685 = vmatprep.mubr.msk.bf16.mxu0 %vm880_vm10, %v865_v0 }
 0x18c   : > { %v558_v7 = vpop.permute.xlu1 %557 }
 0x18d   : > { %v550_v11 = vpop.permute.xlu0 %549  ;;  %v758_v44 = vsel %vm744_vm2, %v2640_v39, %v558_v7 }
 0x18e   : > { %v750_v2 = vsel %vm744_vm2, %v2647_v46, %v550_v11 }
 0x190   : > { %v739_v17 = vpop.permute.xlu1 %738 }
 0x191   : > { %v875_v58 = vsel %vm863_vm9, %v858_v16, %v739_v17  ;;  %v731_v63 = vpop.permute.xlu0 %730 }
 0x192   : > { %1694 = vmatmul.mubr.msk.bf16.vlgmr.msra.gmra.mrb[0].mxu1 %vm880_vm10, %v875_v58  ;;  %v867_v20 = vsel %vm863_vm9, %v850_v19, %v731_v63  ;;  %v1530_v63 = vld [vmem:[#allocation8] ss:$0 sm:$0xff] }
 0x193   : > { %1686 = vmatmul.mubr.msk.bf16.vlgmr.msra.gmra.mrb[0].mxu0 %vm880_vm10, %v867_v20 }
 0x194   : > { %v560_v52 = vpop.permute.xlu1 %559 }
 0x195   : > { %v552_v21 = vpop.permute.xlu0 %551  ;;  %v760_v53 = vsel %vm744_vm2, %v2726_v43, %v560_v52 }
 0x196   : > { %v752_v59 = vsel %vm744_vm2, %v2734_v45, %v552_v21 }
 0x198   : > { %v599_v22 = vpop.permute.xlu1 %598 }
 0x199   : > { %v591_v49 = vpop.permute.xlu0 %590  ;;  %v775_v48 = vsel %vm761_vm3, %v758_v44, %v599_v22 }
 0x19a   : > { %v767_v27 = vsel %vm761_vm3, %v750_v2, %v591_v49 }
 0x19c   : > { %v601_v25 = vpop.permute.xlu1 %600 }
 0x19d   : > { %v593_v26 = vpop.permute.xlu0 %592  ;;  %v777_v56 = vsel %vm761_vm3, %v760_v53, %v601_v25 }
 0x19e   : > { %v769_v3 = vsel %vm761_vm3, %v752_v59, %v593_v26 }
 0x1a0   : > { %v620_v28 = vpop.permute.xlu1 %619 }
 0x1a1   : > { %v612_v29 = vpop.permute.xlu0 %611  ;;  %v792_v50 = vsel %vm778_vm5, %v775_v48, %v620_v28 }
 0x1a2   : > { %v784_v54 = vsel %vm778_vm5, %v767_v27, %v612_v29 }
 0x1a4   : > { %v622_v24 = vpop.permute.xlu1 %621 }
 0x1a5   : > { %v614_v30 = vpop.permute.xlu0 %613  ;;  %v794_v60 = vsel %vm778_vm5, %v777_v56, %v622_v24 }
 0x1a6   : > { %v786_v7 = vsel %vm778_vm5, %v769_v3, %v614_v30 }
 0x1a8   : > { %v651_v31 = vpop.permute.xlu1 %650 }
 0x1a9   : > { %v643_v12 = vpop.permute.xlu0 %642  ;;  %v809_v51 = vsel %vm795_vm4, %v792_v50, %v651_v31 }
 0x1aa   : > { %v801_v57 = vsel %vm795_vm4, %v784_v54, %v643_v12 }
 0x1ac   : > { %v653_v32 = vpop.permute.xlu1 %652 }
 0x1ad   : > { %v645_v33 = vpop.permute.xlu0 %644  ;;  %v811_v5 = vsel %vm795_vm4, %v794_v60, %v653_v32 }
 0x1ae   : > { %v803_v1 = vsel %vm795_vm4, %v786_v7, %v645_v33 }
 0x1b0   : > { %v670_v34 = vpop.permute.xlu1 %669 }
 0x1b1   : > { %v662_v35 = vpop.permute.xlu0 %661  ;;  %v826_v39 = vsel %vm812_vm6, %v809_v51, %v670_v34 }
 0x1b2   : > { %v818_v61 = vsel %vm812_vm6, %v801_v57, %v662_v35 }
 0x1b4   : > { %v672_v36 = vpop.permute.xlu1 %671 }
 0x1b5   : > { %v664_v23 = vpop.permute.xlu0 %663  ;;  %v828_v8 = vsel %vm812_vm6, %v811_v5, %v672_v36 }
 0x1b6   : > { %v820_v13 = vsel %vm812_vm6, %v803_v1, %v664_v23 }
 0x1b8   : > { %v691_v37 = vpop.permute.xlu1 %690 }
 0x1b9   : > { %v683_v38 = vpop.permute.xlu0 %682  ;;  %v843_v46 = vsel %vm829_vm7, %v826_v39, %v691_v37 }
 0x1ba   : > { %v835_v0 = vsel %vm829_vm7, %v818_v61, %v683_v38 }
 0x1bc   : > { %v693_v40 = vpop.permute.xlu1 %692 }
 0x1bd   : > { %v685_v41 = vpop.permute.xlu0 %684  ;;  %v845_v10 = vsel %vm829_vm7, %v828_v8, %v693_v40 }
 0x1be   : > { %v837_v16 = vsel %vm829_vm7, %v820_v13, %v685_v41 }
 0x1c0   : > { %v722_v42 = vpop.permute.xlu1 %721 }
 0x1c1   : > { %v714_v47 = vpop.permute.xlu0 %713  ;;  %v860_v43 = vsel %vm846_vm8, %v843_v46, %v722_v42 }
 0x1c2   : > { %v852_v45 = vsel %vm846_vm8, %v835_v0, %v714_v47 }
 0x1c4   : > { %v724_v4 = vpop.permute.xlu1 %723 }
 0x1c5   : > { %v716_v55 = vpop.permute.xlu0 %715  ;;  %v862_v14 = vsel %vm846_vm8, %v845_v10, %v724_v4 }
 0x1c6   : > { %v854_v18 = vsel %vm846_vm8, %v837_v16, %v716_v55 }
 0x1c8   : > { %v741_v62 = vpop.permute.xlu1 %740 }
 0x1c9   : > { %v877_v6 = vsel %vm863_vm9, %v860_v43, %v741_v62  ;;  %v733_v9 = vpop.permute.xlu0 %732 }
 0x1ca   : > { %1697 = vmatprep.mubr.msk.bf16.mxu1 %vm880_vm10, %v877_v6  ;;  %v869_v11 = vsel %vm863_vm9, %v852_v45, %v733_v9 }
 0x1cb   : > { %1689 = vmatprep.mubr.msk.bf16.mxu0 %vm880_vm10, %v869_v11 }
 0x1cc   : > { %v743_v15 = vpop.permute.xlu1 %742 }
 0x1cd   : > { %v879_v17 = vsel %vm863_vm9, %v862_v14, %v743_v15  ;;  %v735_v58 = vpop.permute.xlu0 %734  ;;  %v2259_v14 = vmov (!%p1563_p7), 0.0  }
 0x1ce   : > { %1698 = vmatmul.mubr.msk.bf16.gmra.mrb[4].mxu1 %vm880_vm10, %v879_v17  ;;  %v871_v19 = vsel %vm863_vm9, %v854_v18, %v735_v58  ;;  %1166 = vst [vmem:[#allocation2] sm:$0x1] (!%p1563_p7), %v2259_v14 }
 0x1cf   : > { %1690 = vmatmul.mubr.msk.bf16.gmra.mrb[4].mxu0 %vm880_vm10, %v871_v19 }
 0x265   : > { %v1695_v20 = vpop.f32.mrb[0].mxu1 }
 0x266   : > { %v2909_v52 = vadd.f32 %v1695_v20, %v1530_v63  ;;  %v1035_v21 = vpop.f32.mrb[1].mxu1  ;;  %v1687_v22 = vpop.f32.mrb[0].mxu0 }
 0x267   : > { %v2911_v49 = vadd.f32 %v1530_v63, %v1035_v21  ;;  %v1696_v25 = vpop.f32.mrb[2].mxu1  ;;  %v2913_v26 = vadd.f32 %v1687_v22, %v1530_v63  ;;  %v1003_v28 = vpop.f32.mrb[1].mxu0 }
 0x268   : > { %v2917_v29 = vadd.f32 %v1696_v25, %v1530_v63  ;;  %v1038_v24 = vpop.f32.mrb[3].mxu1  ;;  %v1004_v30 = vadd.f32 %v1530_v63, %v1003_v28  ;;  %v1688_v31 = vpop.f32.mrb[2].mxu0  ;;  %v1076_v32 = vmax.f32 %v2909_v52, 0.0 }
 0x269   : > { %v2919_v12 = vadd.f32 %v1530_v63, %v1038_v24  ;;  %v1015_v33 = vadd.f32 %v1688_v31, %v1530_v63  ;;  %v1006_v35 = vpop.f32.mrb[3].mxu0  ;;  %v1074_v36 = vmax.f32 %v2911_v49, 0.0  ;;  %v1068_v38 = vmax.f32 %v2913_v26, 0.0 }
 0x26a   : > { %v1077_v34 = vmax.f32 %v2917_v29, 0.0  ;;  %v1007_v23 = vadd.f32 %v1530_v63, %v1006_v35  ;;  %v1066_v42 = vmax.f32 %v1004_v30, 0.0 }
 0x26b   : > { %v1075_v37 = vmax.f32 %v2919_v12, 0.0  ;;  %v1069_v40 = vmax.f32 %v1015_v33, 0.0 }
 0x26c   : > { %v1625_v41 = vpack.c.bf16 %v1077_v34, %v1076_v32  ;;  %v1067_v44 = vmax.f32 %v1007_v23, 0.0 }
 0x26d   : > { %v1620_v47 = vpack.c.bf16 %v1075_v37, %v1074_v36  ;;  %v1605_v48 = vpack.c.bf16 %v1069_v40, %v1068_v38 }
 0x26e   : > { %1641 = vst [vmem:[%s2930_s28 + $0x28] sm:$0xff] %v1625_v41   ;;  %v1600_v2 = vpack.c.bf16 %v1067_v44, %v1066_v42 }
 0x26f   : > { %1640 = vst [vmem:[%s2930_s28 + $0x20] sm:$0xff] %v1620_v47   ;;  %1637 = vst [vmem:[%s2930_s28 + $0x8] sm:$0xff] %v1605_v48  }
 0x270   : > { %1601 = vst [vmem:[%s2930_s28] sm:$0xff] %v1600_v2  }
 0x2a1   : > { %v1699_v50 = vpop.f32.mrb[4].mxu1 }
 0x2a2   : > { %v1060_v4 = vadd.f32 %v1699_v50, %v1530_v63  ;;  %v1051_v27 = vpop.f32.mrb[5].mxu1  ;;  %v1691_v51 = vpop.f32.mrb[4].mxu0 }
 0x2a3   : > { %v1052_v53 = vadd.f32 %v1530_v63, %v1051_v27  ;;  %v1700_v54 = vpop.f32.mrb[6].mxu1  ;;  %v1028_v39 = vadd.f32 %v1691_v51, %v1530_v63  ;;  %v1019_v55 = vpop.f32.mrb[5].mxu0 }
 0x2a4   : > { %v1063_v56 = vadd.f32 %v1700_v54, %v1530_v63  ;;  %v1054_v57 = vpop.f32.mrb[7].mxu1  ;;  %v1020_v46 = vadd.f32 %v1530_v63, %v1019_v55  ;;  %v1692_v59 = vpop.f32.mrb[6].mxu0  ;;  %v1080_v61 = vmax.f32 %v1060_v4, 0.0 }
 0x2a5   : > { %v1055_v60 = vadd.f32 %v1530_v63, %v1054_v57  ;;  %v1031_v43 = vadd.f32 %v1692_v59, %v1530_v63  ;;  %v1022_v3 = vpop.f32.mrb[7].mxu0  ;;  %v1078_v5 = vmax.f32 %v1052_v53, 0.0  ;;  %v1072_v7 = vmax.f32 %v1028_v39, 0.0 }
 0x2a6   : > { %v1081_v62 = vmax.f32 %v1063_v56, 0.0  ;;  %v1023_v0 = vadd.f32 %v1530_v63, %v1022_v3  ;;  %v1070_v9 = vmax.f32 %v1020_v46, 0.0  ;;  %1165 = sbr.rel (%p1563_p7) target bundleno = 685 (0x2ad), region = 64 }
 0x2a7   : > { %v1079_v6 = vmax.f32 %v1055_v60, 0.0  ;;  %v1073_v8 = vmax.f32 %v1031_v43, 0.0 }
 0x2a8   : > { %v1635_v45 = vpack.c.bf16 %v1081_v62, %v1080_v61  ;;  %v1071_v1 = vmax.f32 %v1023_v0, 0.0 }
 0x2a9   : > { %v1630_v10 = vpack.c.bf16 %v1079_v6, %v1078_v5  ;;  %v1615_v11 = vpack.c.bf16 %v1073_v8, %v1072_v7 }
 0x2aa   : > { %1643 = vst [vmem:[%s2930_s28 + $0x38] sm:$0xff] %v1635_v45   ;;  %v1610_v13 = vpack.c.bf16 %v1071_v1, %v1070_v9 }
 0x2ab   : > { %1642 = vst [vmem:[%s2930_s28 + $0x30] sm:$0xff] %v1630_v10   ;;  %1639 = vst [vmem:[%s2930_s28 + $0x18] sm:$0xff] %v1615_v11  }
 0x2ac   : > { %1638 = vst [vmem:[%s2930_s28 + $0x10] sm:$0xff] %v1610_v13  }
 0x2ad PF: > { %v1168_v15 = vadd.f32 %v1067_v44, %v1066_v42  ;;  %v1167_v23 = vld [vmem:[#allocation2] sm:$0x1]  ;;  %s3126_s1 = sld [smem:[#allocation23_spill]] }
 0x2af   : > { %v1169_v16 = vadd.f32 %v1168_v15, %v1068_v38 }
 0x2b1   : > { %v1170_v17 = vadd.f32 %v1169_v16, %v1069_v40 }
 0x2b3   : > { %v1171_v18 = vadd.f32 %v1170_v17, %v1070_v9  ;;  %p1564_p6 = scmp.ne.s32.totalorder %s3126_s1, 1 }
 0x2b4   : > { %v1930_v52 = vld [vmem:[#allocation9] sm:$0xff] (!%p1564_p6)   ;;  %v1931_v29 = vld [vmem:[#allocation9 + $0x8] sm:$0xff] (!%p1564_p6)   ;;  %vm2261_vm11 = vmmov (!%p1564_p6), 0   ;;  %v1936_v42 = vld [vmem:[#allocation9 + $0x30] sm:$0xff] (!%p1564_p6)  }
 0x2b5   : > { %v1172_v58 = vadd.f32 %v1171_v18, %v1071_v1  ;;  %v1935_v41 = vld [vmem:[#allocation9 + $0x28] sm:$0xff] (!%p1564_p6)   ;;  %v1937_v48 = vld [vmem:[#allocation9 + $0x38] sm:$0xff] (!%p1564_p6)   ;;  %v1214_v50 = vld [vmem:[#allocation11] sm:$0x1] (!%p1564_p6) }
 0x2b7   : > { %v1173_v19 = vadd.f32 %v1172_v58, %v1072_v7 }
 0x2b9   : > { %v1174_v63 = vadd.f32 %v1173_v19, %v1073_v8 }
 0x2bb   : > { %v1175_v20 = vadd.f32 %v1174_v63, %v1074_v36  ;;  %v1933_v36 = vld [vmem:[#allocation9 + $0x18] sm:$0xff] (!%p1564_p6)  }
 0x2bd   : > { %v1176_v21 = vadd.f32 %v1175_v20, %v1075_v37  ;;  %v1934_v37 = vld [vmem:[#allocation9 + $0x20] sm:$0xff] (!%p1564_p6)  }
 0x2bf   : > { %v1177_v22 = vadd.f32 %v1176_v21, %v1076_v32  ;;  %v2260_v32 = vmov (!%p1564_p6), 0.0  }
 0x2c0   : > { %1701 = vmatprep.subr.bf16.mxu0 (!%p1564_p6), %v2260_v32  ;;  %1717 = vmatprep.mubr.msk.bf16.mxu0 (!%p1564_p6), %vm2261_vm11, %v2260_v32 }
 0x2c1   : > { %v1178_v49 = vadd.f32 %v1177_v22, %v1077_v34  ;;  %1702 = vmatpush3.bf16.msra.mxu0 (!%p1564_p6), %v1930_v52  ;;  %v1932_v34 = vld [vmem:[#allocation9 + $0x10] sm:$0xff] (!%p1564_p6)  }
 0x2c2   : > { %1703 = vmatprep.subr.bf16.mxu0 (!%p1564_p6), %v2260_v32 }
 0x2c3   : > { %v1179_v25 = vadd.f32 %v1178_v49, %v1078_v5 }
 0x2c5   : > { %v1180_v26 = vadd.f32 %v1179_v25, %v1079_v6  ;;  %1704 = vmatpush3.bf16.msra.mxu0 (!%p1564_p6), %v1931_v29 }
 0x2c6   : > { %1705 = vmatprep.subr.bf16.mxu0 (!%p1564_p6), %v2260_v32 }
 0x2c7   : > { %v1181_v28 = vadd.f32 %v1180_v26, %v1080_v61 }
 0x2c9   : > { %v1182_v24 = vadd.f32 %v1181_v28, %v1081_v62  ;;  %1706 = vmatpush3.bf16.msra.mxu0 (!%p1564_p6), %v1932_v34 }
 0x2ca   : > { %1707 = vmatprep.subr.bf16.mxu0 (!%p1564_p6), %v2260_v32 }
 0x2cb   : > { %v1183_v30 = vrot.slane %v1182_v24, 4 }
 0x2cd   : > { %v1184_v31 = vadd.f32 %v1183_v30, %v1182_v24  ;;  %1708 = vmatpush3.bf16.msra.mxu0 (!%p1564_p6), %v1933_v36 }
 0x2ce   : > { %1709 = vmatprep.subr.bf16.mxu0 (!%p1564_p6), %v2260_v32 }
 0x2cf   : > { %v1185_v12 = vrot.slane %v1184_v31, 2 }
 0x2d1   : > { %v1186_v33 = vadd.f32 %v1185_v12, %v1184_v31  ;;  %1710 = vmatpush3.bf16.msra.mxu0 (!%p1564_p6), %v1934_v37 }
 0x2d2   : > { %1711 = vmatprep.subr.bf16.mxu0 (!%p1564_p6), %v2260_v32 }
 0x2d3   : > { %v1187_v35 = vrot.slane %v1186_v33, 1  ;;  %1194 = sbr.rel (%p1564_p6) target bundleno = 956 (0x3bc), region = 68 }
 0x2d5   : > { %v1188_v38 = vadd.f32 %v1187_v35, %v1186_v33  ;;  %1712 = vmatpush3.bf16.msra.mxu0 (!%p1564_p6), %v1935_v41 }
 0x2d6   : > { %1713 = vmatprep.subr.bf16.mxu0 (!%p1564_p6), %v2260_v32 }
 0x2d7   : > { %v1189_v40 = vadd.f32 %v1188_v38, %v1167_v23 }
 0x2d9   : > { %1190 = vst [vmem:[#allocation2] sm:$0x1] %v1189_v40  ;;  %1714 = vmatpush3.bf16.msra.mxu0 (!%p1564_p6), %v1936_v42 }
 0x2da   : > { %1715 = vmatprep.subr.bf16.mxu0 %v2260_v32 }
 0x2dd   : > { %1716 = vmatpush3.bf16.msra.mxu0 %v1937_v48 }
 0x2e0   : > { %v1195_v44 = vld [vmem:[#allocation2] sm:$0x1] }
 0x2e1   : > { %v1196_v47 = vmul.f32 0.00390625, %v1195_v44 }
 0x2e3   : > { %v1197_v2 = vpack.c.bf16 %v1196_v47, %v1196_v47 }
 0x2e5   : > { %1718 = vmatmul.mubr.bf16.vlgmr.msra.gmra.mrb[0].mxu0 %v1197_v2 }
 0x3b8   : > { %v1297_v4 = vpop.f32.mrb[0].mxu0 }
 0x3b9   : > { %v1298_v27 = vadd.f32 %v1297_v4, %v1214_v50  ;;  %v1719_v51 = vpop.f32.mrb[1].mxu0 }
 0x3ba   : > { %v1300_v53 = vpop.f32.mrb[2].mxu0 }
 0x3bb   : > { %1303 = vst [vmem:[%s3081_s16] sm:$0x1] %v1298_v27  ;;  %v1720_v54 = vpop.f32.mrb[3].mxu0 }
 0x3bc PF: > { %s3127_s21 = sld [smem:[#allocation23_spill]]  ;;  %s3128_s12 = sld [smem:[#allocation24_spill]] }
 0x3bd   : > { %s3130_s20 = sld [smem:[#allocation26_spill]]  ;;  %s1324_s13 = sshll.u32 %s2930_s28, 4  ;;  %s2952_s13 = int_to_ptr.vmem [resolvable:$true] %s1324_s13 }
 0x3be   : > { %s3131_s16 = sld [smem:[#allocation34_spill]]  ;;  %s2961_s0 = scalar_lea.sflag [#allocation5], %s339_s9 }
 0x3bf   : > { %s2080_s2 = scalar_lea.vmem %s2952_s13, 1024  ;;  %s2262_s28 = smov [#allocation12]  }
 0x3c0   : > { %p2081_p11 = scmp.ne.s32.totalorder %s2952_s13, %s2080_s2 }
 0x3c2   : > { %s1574_s18 = sshll.u32 %s3127_s21, 4  ;;  %s1575_s22 = sshll.u32 %s3128_s12, 5 }
 0x3c3   : > { %s1321_s14 = sadd.s32 %s1575_s22, %s1574_s18  ;;  %p3132_p12 = scmp.ne.s32.totalorder %s3130_s20, 0 }
 0x3c4   : > { %s1576_s24 = sshll.u32 %s1321_s14, 6  ;;  %s2084_s21 = sshll.u32 %s2262_s28, 4  ;;  %s2085_s21 = int_to_ptr.vmem [resolvable:$false] %s2084_s21 }
 0x3c5   : > { %s2957_s6 = scalar_lea.hbm %s3131_s16, %s1576_s24  ;;  %p2082_p0 = pnand %p2081_p11, %p3132_p12 }
 0x3c6   : > { %s2086_s18 = scalar_lea.vmem %s2085_s21, 2048  ;;  %p2087_p13 = scmp.lt.s32.totalorder %s2952_s13, %s2085_s21 }
 0x3c7   : > { %p2083_p8 = pneg %p2082_p0  ;;  %p2088_p1 = scmp.lt.s32.totalorder %s2086_s18, %s2080_s2 }
 0x3c9   : > { %p2089_p3 = por %p2088_p1, %p2087_p13 }
 0x3cb   : > { %p2090_p4 = pnand %p2089_p3, %p2083_p8 }
 0x3cd   : > { %2093 = shalt.err (!%p2090_p4)
}
 0x3ce   : > { %s2094_s9 = scalar_lea.hbm %s2957_s6, 1024  ;;  %s2098_s14 = scalar_lea.hbm %s3131_s16, 4096 }
 0x3cf   : > { %p2095_p9 = scmp.ne.s32.totalorder %s2957_s6, %s2094_s9  ;;  %p2099_p7 = scmp.lt.u32.totalorder %s2957_s6, %s3131_s16 }
 0x3d0   : > { %p2100_p6 = scmp.lt.u32.totalorder %s2098_s14, %s2094_s9  ;;  %p2102_p0 = scmp.lt.u32.totalorder %s2094_s9, %s2957_s6 }
 0x3d1   : > { %p2096_p5 = pnand %p2095_p9, %p3132_p12 }
 0x3d2   : > { %p2101_p11 = por %p2100_p6, %p2099_p7 }
 0x3d3   : > { %p2097_p2 = pneg %p2096_p5 }
 0x3d4   : > { %p2103_p8 = por %p2102_p0, %p2101_p11 }
 0x3d6   : > { %p2104_p13 = pnand %p2103_p8, %p2097_p2 }
 0x3d8   : > { %2107 = shalt.err (!%p2104_p13)
}
 0x3d9   : > { %s2263_s2 = smov 64   ;;  %s3133_s1 = smov 4  }
 0x3da   : > { %1758 = dma.vmem_to_hbm [thread:$0]  (%p3132_p12), %s2952_s13, 1024, %s2957_s6, %s2961_s0, %s2263_s2, %s2263_s2, %s3133_s1  }
 0x3db   : > { %s1577_s28 = sshll.u32 %s3128_s12, 4  ;;  %s3134_s21 = scalar_lea.vmem [#allocation13], %s2573_s10 }
 0x3dc   : > { %s1340_s18 = sshll.u32 %s3134_s21, 4  ;;  %s3135_s22 = sld [smem:[#allocation35_spill]]  ;;  %s1341_s18 = int_to_ptr.vmem [resolvable:$true] %s1340_s18 }
 0x3dd   : > { %s1310_s15 = scalar_lea.sflag [#allocation14], %s2573_s10  ;;  %s2108_s20 = scalar_lea.vmem %s1341_s18, 16 }
 0x3de   : > { %p2109_p1 = scmp.ne.s32.totalorder %s1341_s18, %s2108_s20  ;;  %s2264_s3 = smov [#allocation13]  }
 0x3df   : > { %s2112_s4 = sshll.u32 %s2264_s3, 4  ;;  %s2113_s4 = int_to_ptr.vmem [resolvable:$false] %s2112_s4 }
 0x3e0   : > { %p2110_p3 = pnand %p2109_p1, %p2507_p10  ;;  %s2114_s16 = scalar_lea.vmem %s2113_s4, 32 }
 0x3e1   : > { %p2115_p12 = scmp.lt.s32.totalorder %s1341_s18, %s2113_s4  ;;  %p2116_p9 = scmp.lt.s32.totalorder %s2114_s16, %s2108_s20 }
 0x3e2   : > { %s3136_s14 = smov %s3135_s22  ;;  %s2992_s24 = scalar_lea.hbm %s3135_s22, %s1577_s28 }
 0x3e3   : > { %p2111_p4 = pneg %p2110_p3  ;;  %p2117_p5 = por %p2116_p9, %p2115_p12 }
 0x3e5   : > { %p2118_p2 = pnand %p2117_p5, %p2111_p4 }
 0x3e7   : > { %2121 = shalt.err (!%p2118_p2)
}
 0x3e8   : > { %s2122_s0 = scalar_lea.hbm %s2992_s24, 16  ;;  %s2126_s3 = scalar_lea.hbm %s3136_s14, 32 }
 0x3e9   : > { %p2123_p7 = scmp.ne.s32.totalorder %s2992_s24, %s2122_s0  ;;  %p2127_p0 = scmp.lt.u32.totalorder %s2992_s24, %s3136_s14 }
 0x3ea   : > { %p2128_p8 = scmp.lt.u32.totalorder %s2126_s3, %s2122_s0  ;;  %p2130_p1 = scmp.lt.u32.totalorder %s2122_s0, %s2992_s24 }
 0x3eb   : > { %p2124_p6 = pnand %p2123_p7, %p2507_p10 }
 0x3ec   : > { %p2129_p13 = por %p2128_p8, %p2127_p0 }
 0x3ed   : > { %p2125_p11 = pneg %p2124_p6 }
 0x3ee   : > { %p2131_p3 = por %p2130_p1, %p2129_p13 }
 0x3f0   : > { %p2132_p4 = pnand %p2131_p3, %p2125_p11 }
 0x3f2   : > { %2135 = shalt.err (!%p2132_p4)
}
 0x3f3   : > { %1759 = dma.vmem_to_hbm [thread:$0]  (%p2507_p10), %s1341_s18, 16, %s2992_s24, %s1310_s15  }
 0x3f4 PF: > { %s3137_s16 = sld [smem:[#allocation20_spill]]  ;;  %s3138_s13 = sld [smem:[#allocation27_spill]] }
 0x3f5   : > { %p1795_p12 = scmp.ge.s32.totalorder %s2242_s7, 2 }
 0x3fa   : > { %s1352_s2 = sand.u32 1, %s3137_s16   ;;  %p3139_p9 = scmp.ne.s32.totalorder %s3138_s13, 0 }
 0x3fb   : > { %s1353_s1 = scalar_lea.sflag [#allocation5], %s1352_s2 }
 0x3fc   : > { %p1780_p5 = pnand %p1795_p12, %p3139_p9 }
 0x3fe   : > { %2193 = dma.done.wait (!%p1780_p5), %s1353_s1, 1024  }
 0x3ff   : > { %2195 = vsyncadd (!%p1780_p5), %s1353_s1, 4294966272  ;;  %s3140_s28 = sld [smem:[#allocation22_spill]]  ;;  %s3141_s21 = sld [smem:[#allocation28_spill]] }
 0x405   : > { %s1361_s19 = sand.u32 1, %s3140_s28   ;;  %p3142_p2 = scmp.ne.s32.totalorder %s3141_s21, 0 }
 0x406   : > { %s1362_s9 = scalar_lea.sflag [#allocation14], %s1361_s19 }
 0x407   : > { %p1783_p7 = pnand %p1795_p12, %p3142_p2 }
 0x409   : > { %2197 = dma.done.wait (!%p1783_p7), %s1362_s9, 16  }
 0x40a   : > { %2199 = vsyncadd (!%p1783_p7), %s1362_s9, 4294967280  ;;  %s28_s7 = sadd.s32 1, %s2242_s7   ;;  %s3143_s21 = sld [smem:[#allocation21_spill]] }
 0x40b   : > { %p25_p10 = scmp.ge.s32.totalorder %s28_s7, 6   ;;  %s3144_s5 = smov %s3159_s27 }
 0x40c   : > { %s3145_s22 = smov %s2210_s23  ;;  %s3146_s23 = smov %s2522_s11 }
 0x40d   : > { %s3147_s24 = smov %s2218_s25  ;;  %s3148_s25 = smov %s2222_s26 }
 0x40e   : > { %s3149_s26 = smov %s2519_s8  ;;  %s3150_s27 = smov %s2234_s29 }
 0x40f   : > { %s3151_s28 = smov %s2238_s30  ;;  %s3152_s29 = smov %s3155_s17 }
 0x410   : > { %s3153_s30 = smov %s3144_s5  ;;  %27 = sbr.rel (!%p25_p10) target bundleno = 21 (0x15), region = 127 }
 0x417   :  { %1366 = vsyncpa [#allocation4], 1 }
 0x418   :  { %1368 = vsyncpa [#allocation4 + $0x1], 1 }
 0x419   :  { %1369 = vsyncpa [#allocation7], 1 }
 0x41a   :  { %1370 = vsyncpa [#allocation10], 1 }
 0x41b   :  { %1371 = vsyncpa [#allocation5], 1 }
 0x41c   :  { %1373 = vsyncpa [#allocation5 + $0x1], 1 }
 0x41d   :  { %1374 = vsyncpa [#allocation14], 1 }
 0x41e   :  { %1376 = vsyncpa [#allocation14 + $0x1], 1 }

</bundles_post_ra>
